<compile_context>
chip_gen: v7x
topology: tpu7x:2x2x1
jax: 0.10.0
libtpu: 0.0.40
codegen_flags: <defaults>
</compile_context>

<pallas_src>
import jax
import jax.numpy as jnp
from jax.experimental import pallas as pl
from jax.experimental.pallas import tpu as pltpu

T = 8              # sequence length implied by word_inputs.view(batch, -1, hidden)
H = 32             # hidden_size (small-shape stand-in, consistent with the module)
H3 = 3 * H
OUT = 16           # out_size
L = 2              # n_layers
B = 1              # module-default batch_size (kernel/wrapper handle general B)
DTYPE = jnp.float32
WDTYPE = jnp.bfloat16        # MXU operand dtype; accumulation + gate math stay f32
WPACK_COLS = 256             # lane-aligned packed-weight width


def _gru_kernel(x_ref, h0_ref, w_ref, b_ref, out_ref, hn_ref):
    bb = x_ref.shape[0]

    # Packed parameters (2 DMAs total for all weights/biases).
    wi0 = w_ref[0:H, 0:H3]                   # layer-0 fused input proj      (H, 3H)
    wh0 = w_ref[0:H, 128:128 + H3]           # layer-0 fused recurrent proj  (H, 3H)
    w1f = w_ref[H:3 * H, 0:2 * H3]           # layer-1 blockdiag(wi1, wh1)   (2H, 6H)
    wout = w_ref[3 * H:4 * H, 0:OUT]         # head                          (H, OUT)
    bi0 = b_ref[0:1, 0:H3]                   # folded r/z (+n input) biases, layer 0
    bi1 = b_ref[1:2, 0:H3]
    bhn0 = b_ref[2:3, 0:H]                   # n-gate hidden bias (scaled by r)
    bhn1 = b_ref[3:4, 0:H]
    bout = b_ref[4:5, 0:OUT]

    # Hoisted layer-0 input projection: one (bb*T, H)@(H, 3H) matmul, off the
    # recurrent critical path.
    x2 = x_ref[...].astype(WDTYPE).reshape(bb * T, H)
    xp0 = (jnp.dot(x2, wi0, preferred_element_type=jnp.float32) + bi0
           ).reshape(bb, T, H3)

    h0 = h0_ref[0]                           # (bb, H) f32
    h1 = h0_ref[1]

    def gru_gates(xp, hp, bhn, h):
        # Merged r/z sigmoid over contiguous lanes [0:2H); 3-op GRU blend.
        rz = jax.nn.sigmoid(xp[:, 0:2 * H] + hp[:, 0:2 * H])
        r = rz[:, 0:H]
        z = rz[:, H:2 * H]
        n = jnp.tanh(xp[:, 2 * H:H3] + r * (hp[:, 2 * H:H3] + bhn))
        return n + z * (h - n)               # == (1 - z) * n + z * h

    # Fully unrolled wavefront over the two layer recurrences.
    for t in range(T):
        # Layer 0: single dependent matmul per step.
        hp0 = jnp.dot(h0.astype(WDTYPE), wh0, preferred_element_type=jnp.float32)
        h0 = gru_gates(xp0[:, t, :], hp0, bhn0, h0)
        # Layer 1: fused input+recurrent projection; N=192 is one pass on the
        # 256-wide v6e/v7x MXU (splits into 2 passes on v5e, same as two dots).
        xh = jnp.concatenate([h0.astype(WDTYPE), h1.astype(WDTYPE)], axis=-1)
        g = jnp.dot(xh, w1f, preferred_element_type=jnp.float32)      # (bb, 6H)
        h1 = gru_gates(g[:, 0:H3] + bi1, g[:, H3:2 * H3], bhn1, h1)

    hn_ref[0] = h0
    hn_ref[1] = h1
    # Linear head on output[:, -1, :] == top-layer hidden at the last step.
    out_ref[...] = (jnp.dot(h1.astype(WDTYPE), wout,
                            preferred_element_type=jnp.float32) + bout)
    # TODO(synk): explicit pltpu.matmul_push_rhs residency for wh0/w1f (and a
    # bf16-carried h on v6e/v7x) could shave a few more cycles per step; skipped
    # to keep a single portable lowering across v5e/v6e/v7x.


def init_params(key):
    """Deterministic synthetic parameters in PyTorch GRU/Linear layout."""
    k = float(1.0 / (H ** 0.5))
    keys = jax.random.split(key, 6)
    # (n_layers, 3 gates [r, z, n], out_features, in_features) — PyTorch layout
    wih = jax.random.uniform(keys[0], (L, 3, H, H), DTYPE, -k, k)
    whh = jax.random.uniform(keys[1], (L, 3, H, H), DTYPE, -k, k)
    bih = jax.random.uniform(keys[2], (L, 3, H), DTYPE, -k, k)
    bhh = jax.random.uniform(keys[3], (L, 3, H), DTYPE, -k, k)
    wout = jax.random.uniform(keys[4], (OUT, H), DTYPE, -k, k)
    bout = jax.random.uniform(keys[5], (1, OUT), DTYPE, -k, k)
    return wih, whh, bih, bhh, wout, bout


def prepare_params(params):
    """One-time parameter prep. Call once; reuse the result for every forward.

    Fuses the three gate matrices per projection, folds the r/z biases
    (b_i + b_h), builds the layer-1 block-diagonal [wi1 0; 0 wh1] matrix, and
    packs everything into one bf16 weight slab + one f32 bias vreg.
    """
    wih, whh, bih, bhh, wout, bout = params
    # (L,3,Hout,Hin) -> per-gate (L,Hin,Hout) -> gate concat (L,H,3H), order r,z,n
    wi = jnp.concatenate([jnp.swapaxes(wih[:, g], -1, -2) for g in range(3)], axis=-1)
    wh = jnp.concatenate([jnp.swapaxes(whh[:, g], -1, -2) for g in range(3)], axis=-1)
    bi = jnp.concatenate([bih[:, 0] + bhh[:, 0],          # r: b_ir + b_hr
                          bih[:, 1] + bhh[:, 1],          # z: b_iz + b_hz
                          bih[:, 2]], axis=-1)            # n: b_in (b_hn kept apart)
    bhn = bhh[:, 2]

    zero = jnp.zeros((H, H3), DTYPE)
    w1f = jnp.concatenate(
        [jnp.concatenate([wi[1], zero], axis=1),
         jnp.concatenate([zero, wh[1]], axis=1)], axis=0)           # (2H, 6H)

    wpack = jnp.zeros((4 * H, WPACK_COLS), WDTYPE)
    wpack = wpack.at[0:H, 0:H3].set(wi[0].astype(WDTYPE))
    wpack = wpack.at[0:H, 128:128 + H3].set(wh[0].astype(WDTYPE))
    wpack = wpack.at[H:3 * H, 0:2 * H3].set(w1f.astype(WDTYPE))
    wpack = wpack.at[3 * H:4 * H, 0:OUT].set(wout.T.astype(WDTYPE))

    bpack = jnp.zeros((8, 128), DTYPE)
    bpack = bpack.at[0, 0:H3].set(bi[0])
    bpack = bpack.at[1, 0:H3].set(bi[1])
    bpack = bpack.at[2, 0:H].set(bhn[0])
    bpack = bpack.at[3, 0:H].set(bhn[1])
    bpack = bpack.at[4, 0:OUT].set(bout[0])
    return wpack, bpack


def encoder_rnn_forward(word_inputs, hidden, prepped):
    """Forward pass. `prepped` = prepare_params(raw_params), computed once."""
    wpack, bpack = prepped
    bn = hidden.shape[1]
    x = word_inputs.reshape(bn, -1, H).astype(DTYPE)   # the module's .view() glue
    assert x.shape[1] == T, f"kernel specialized for T={T}, got {x.shape[1]}"

    # Batch blocking: one block when the batch is small (a grid would only add
    # per-step overhead to a ~µs kernel); 8-row blocks + a parallel grid axis
    # otherwise so v7x can shard blocks across its two TensorCores.
    if bn > 8:
        assert bn % 8 == 0, "batch > 8 must be a multiple of 8"
        bb = 8
    else:
        bb = bn
    grid = (bn // bb,)

    out, h_n = pl.pallas_call(
        _gru_kernel,
        out_shape=(jax.ShapeDtypeStruct((bn, OUT), DTYPE),    # output[:, -1, :]
                   jax.ShapeDtypeStruct((L, bn, H), DTYPE)),  # final hidden
        grid=grid,
        in_specs=[
            pl.BlockSpec((bb, T, H), lambda i: (i, 0, 0)),
            pl.BlockSpec((L, bb, H), lambda i: (0, i, 0)),
            pl.BlockSpec((4 * H, WPACK_COLS), lambda i: (0, 0)),
            pl.BlockSpec((8, 128), lambda i: (0, 0)),
        ],
        out_specs=(
            pl.BlockSpec((bb, OUT), lambda i: (i, 0)),
            pl.BlockSpec((L, bb, H), lambda i: (0, i, 0)),
        ),
        compiler_params=pltpu.CompilerParams(
            dimension_semantics=("parallel",)),
    )(x, hidden, wpack, bpack)
    return out, h_n


def _reference_forward(word_inputs, hidden, params):
    """Pure-JAX f32 PyTorch-GRU reference for validation."""
    wih, whh, bih, bhh, wout, bout = params
    bn = hidden.shape[1]
    x = word_inputs.reshape(bn, -1, H)
    h = [hidden[l] for l in range(L)]
    for t in range(x.shape[1]):
        inp = x[:, t, :]
        for l in range(L):
            r = jax.nn.sigmoid(inp @ wih[l, 0].T + bih[l, 0]
                               + h[l] @ whh[l, 0].T + bhh[l, 0])
            z = jax.nn.sigmoid(inp @ wih[l, 1].T + bih[l, 1]
                               + h[l] @ whh[l, 1].T + bhh[l, 1])
            n = jnp.tanh(inp @ wih[l, 2].T + bih[l, 2]
                         + r * (h[l] @ whh[l, 2].T + bhh[l, 2]))
            h[l] = (1.0 - z) * n + z * h[l]
            inp = h[l]
    out = h[L - 1] @ wout.T + bout
    return out, jnp.stack(h)


if __name__ == "__main__":
    key = jax.random.PRNGKey(0)
    pkey, xkey, bkey = jax.random.split(key, 3)
    params = init_params(pkey)
    prepped = prepare_params(params)   # hoisted: runs ONCE, not per forward call
    fwd = jax.jit(encoder_rnn_forward)

    # Module-default shapes: batch_size=1, word_inputs views to (1, T, H).
    word_inputs = jax.random.normal(xkey, (B, T * H), DTYPE)
    hidden = jnp.zeros((L, B, H), DTYPE)          # init_hidden(): zeros
    out, h_n = fwd(word_inputs, hidden, prepped)
    jax.block_until_ready((out, h_n))
    assert out.shape == (B, OUT) and h_n.shape == (L, B, H)

    # Validate against an f32 reference (bf16 MXU operands -> loose tolerance).
    ref_out, ref_hn = _reference_forward(word_inputs, hidden, params)
    assert float(jnp.max(jnp.abs(out - ref_out))) < 8e-2
    assert float(jnp.max(jnp.abs(h_n - ref_hn))) < 8e-2

    # Batched path (fills the otherwise-idle sublane dimension; same kernel).
    bsz = 4
    wi_b = jax.random.normal(bkey, (bsz, T * H), DTYPE)
    hid_b = jnp.zeros((L, bsz, H), DTYPE)
    out_b, hn_b = fwd(wi_b, hid_b, prepped)
    jax.block_until_ready((out_b, hn_b))
    ref_out_b, ref_hn_b = _reference_forward(wi_b, hid_b, params)
    assert float(jnp.max(jnp.abs(out_b - ref_out_b))) < 8e-2
    assert float(jnp.max(jnp.abs(hn_b - ref_hn_b))) < 8e-2

    print("KERNEL_OK")
</pallas_src>

<mosaic_0001>
module attributes {stable_mosaic.version = 11 : i64} {
  func.func @_gru_kernel(%arg0: i32, %arg1: memref<1x8x32xf32, #tpu.memory_space<vmem>>, %arg2: memref<2x1x32xf32, #tpu.memory_space<vmem>>, %arg3: memref<128x256xbf16, #tpu.memory_space<vmem>>, %arg4: memref<8x128xf32, #tpu.memory_space<vmem>>, %arg5: memref<1x16xf32, #tpu.memory_space<vmem>>, %arg6: memref<2x1x32xf32, #tpu.memory_space<vmem>>) attributes {dimension_semantics = [#tpu.dimension_semantics<parallel>], iteration_bounds = array<i64: 1>, scalar_prefetch = 0 : i64, scratch_operands = 0 : i64, tpu.core_type = #tpu.core_type<tc>, window_params = [{transform_indices = @transform_0, window_bounds = array<i64: 1, 8, 32>}, {transform_indices = @transform_1, window_bounds = array<i64: 2, 1, 32>}, {pipeline_mode = #tpu.pipeline_mode<synchronous>, transform_indices = @transform_2, window_bounds = array<i64: 128, 256>}, {pipeline_mode = #tpu.pipeline_mode<synchronous>, transform_indices = @transform_3, window_bounds = array<i64: 8, 128>}, {transform_indices = @transform_4, window_bounds = array<i64: 1, 16>}, {transform_indices = @transform_5, window_bounds = array<i64: 2, 1, 32>}]} {
    %c0 = arith.constant 0 : index
    %c0_0 = arith.constant 0 : index
    %0 = vector.load %arg3[%c0, %c0_0] : memref<128x256xbf16, #tpu.memory_space<vmem>>, vector<32x96xbf16>
    %c0_1 = arith.constant 0 : index
    %c128 = arith.constant 128 : index
    %1 = vector.load %arg3[%c0_1, %c128] : memref<128x256xbf16, #tpu.memory_space<vmem>>, vector<32x96xbf16>
    %c32 = arith.constant 32 : index
    %c0_2 = arith.constant 0 : index
    %2 = vector.load %arg3[%c32, %c0_2] : memref<128x256xbf16, #tpu.memory_space<vmem>>, vector<64x192xbf16>
    %c96 = arith.constant 96 : index
    %c0_3 = arith.constant 0 : index
    %3 = vector.load %arg3[%c96, %c0_3] : memref<128x256xbf16, #tpu.memory_space<vmem>>, vector<32x16xbf16>
    %c0_4 = arith.constant 0 : index
    %c0_5 = arith.constant 0 : index
    %4 = vector.load %arg4[%c0_4, %c0_5] : memref<8x128xf32, #tpu.memory_space<vmem>>, vector<1x96xf32>
    %c1 = arith.constant 1 : index
    %c0_6 = arith.constant 0 : index
    %5 = vector.load %arg4[%c1, %c0_6] : memref<8x128xf32, #tpu.memory_space<vmem>>, vector<1x96xf32>
    %c2 = arith.constant 2 : index
    %c0_7 = arith.constant 0 : index
    %6 = vector.load %arg4[%c2, %c0_7] : memref<8x128xf32, #tpu.memory_space<vmem>>, vector<1x32xf32>
    %c3 = arith.constant 3 : index
    %c0_8 = arith.constant 0 : index
    %7 = vector.load %arg4[%c3, %c0_8] : memref<8x128xf32, #tpu.memory_space<vmem>>, vector<1x32xf32>
    %c4 = arith.constant 4 : index
    %c0_9 = arith.constant 0 : index
    %8 = vector.load %arg4[%c4, %c0_9] : memref<8x128xf32, #tpu.memory_space<vmem>>, vector<1x16xf32>
    %c0_10 = arith.constant 0 : index
    %c0_11 = arith.constant 0 : index
    %c0_12 = arith.constant 0 : index
    %9 = vector.load %arg1[%c0_10, %c0_11, %c0_12] : memref<1x8x32xf32, #tpu.memory_space<vmem>>, vector<1x8x32xf32>
    %10 = arith.truncf %9 : vector<1x8x32xf32> to vector<1x8x32xbf16>
    %11 = vector.shape_cast %10 : vector<1x8x32xbf16> to vector<8x32xbf16>
    %cst = arith.constant dense<0.000000e+00> : vector<8x96xf32>
    %12 = tpu.matmul %11, %0, %cst {dimension_numbers = #tpu.dot_dimension_numbers<[1], [0], [0], [1], [0, 0, 1, 1], [], []>} : vector<8x32xbf16>, vector<32x96xbf16>, vector<8x96xf32> -> vector<8x96xf32>
    %13 = vector.broadcast %4 : vector<1x96xf32> to vector<8x96xf32>
    %14 = arith.addf %12, %13 : vector<8x96xf32>
    %15 = vector.shape_cast %14 : vector<8x96xf32> to vector<1x8x96xf32>
    %c0_13 = arith.constant 0 : index
    %c0_14 = arith.constant 0 : index
    %c0_15 = arith.constant 0 : index
    %16 = vector.load %arg2[%c0_13, %c0_14, %c0_15] : memref<2x1x32xf32, #tpu.memory_space<vmem>>, vector<1x1x32xf32>
    %17 = vector.shape_cast %16 : vector<1x1x32xf32> to vector<1x32xf32>
    %c1_16 = arith.constant 1 : index
    %c0_17 = arith.constant 0 : index
    %c0_18 = arith.constant 0 : index
    %18 = vector.load %arg2[%c1_16, %c0_17, %c0_18] : memref<2x1x32xf32, #tpu.memory_space<vmem>>, vector<1x1x32xf32>
    %19 = vector.shape_cast %18 : vector<1x1x32xf32> to vector<1x32xf32>
    %20 = arith.truncf %17 : vector<1x32xf32> to vector<1x32xbf16>
    %cst_19 = arith.constant dense<0.000000e+00> : vector<1x96xf32>
    %21 = tpu.matmul %20, %1, %cst_19 {dimension_numbers = #tpu.dot_dimension_numbers<[1], [0], [0], [1], [0, 0, 1, 1], [], []>} : vector<1x32xbf16>, vector<32x96xbf16>, vector<1x96xf32> -> vector<1x96xf32>
    %22 = vector.extract_strided_slice %15 {offsets = [0, 0, 0], sizes = [1, 1, 96], strides = [1, 1, 1]} : vector<1x8x96xf32> to vector<1x1x96xf32>
    %23 = vector.shape_cast %22 : vector<1x1x96xf32> to vector<1x96xf32>
    %24 = vector.extract_strided_slice %23 {offsets = [0, 0], sizes = [1, 64], strides = [1, 1]} : vector<1x96xf32> to vector<1x64xf32>
    %25 = vector.extract_strided_slice %21 {offsets = [0, 0], sizes = [1, 64], strides = [1, 1]} : vector<1x96xf32> to vector<1x64xf32>
    %26 = arith.addf %24, %25 : vector<1x64xf32>
    %27 = arith.negf %26 : vector<1x64xf32>
    %28 = math.exp %27 : vector<1x64xf32>
    %cst_20 = arith.constant 1.000000e+00 : f32
    %29 = vector.broadcast %cst_20 : f32 to vector<1x64xf32>
    %30 = arith.addf %29, %28 : vector<1x64xf32>
    %31 = arith.divf %29, %30 : vector<1x64xf32>
    %32 = vector.extract_strided_slice %31 {offsets = [0, 0], sizes = [1, 32], strides = [1, 1]} : vector<1x64xf32> to vector<1x32xf32>
    %33 = vector.extract_strided_slice %31 {offsets = [0, 32], sizes = [1, 32], strides = [1, 1]} : vector<1x64xf32> to vector<1x32xf32>
    %34 = vector.extract_strided_slice %23 {offsets = [0, 64], sizes = [1, 32], strides = [1, 1]} : vector<1x96xf32> to vector<1x32xf32>
    %35 = vector.extract_strided_slice %21 {offsets = [0, 64], sizes = [1, 32], strides = [1, 1]} : vector<1x96xf32> to vector<1x32xf32>
    %36 = arith.addf %35, %6 : vector<1x32xf32>
    %37 = arith.mulf %32, %36 : vector<1x32xf32>
    %38 = arith.addf %34, %37 : vector<1x32xf32>
    %39 = math.tanh %38 : vector<1x32xf32>
    %40 = arith.subf %17, %39 : vector<1x32xf32>
    %41 = arith.mulf %33, %40 : vector<1x32xf32>
    %42 = arith.addf %39, %41 : vector<1x32xf32>
    %43 = arith.truncf %42 : vector<1x32xf32> to vector<1x32xbf16>
    %44 = arith.truncf %19 : vector<1x32xf32> to vector<1x32xbf16>
    %45 = tpu.concatenate %43, %44 in 1 : vector<1x32xbf16>, vector<1x32xbf16> -> vector<1x64xbf16>
    %cst_21 = arith.constant dense<0.000000e+00> : vector<1x192xf32>
    %46 = tpu.matmul %45, %2, %cst_21 {dimension_numbers = #tpu.dot_dimension_numbers<[1], [0], [0], [1], [0, 0, 1, 1], [], []>} : vector<1x64xbf16>, vector<64x192xbf16>, vector<1x192xf32> -> vector<1x192xf32>
    %47 = vector.extract_strided_slice %46 {offsets = [0, 0], sizes = [1, 96], strides = [1, 1]} : vector<1x192xf32> to vector<1x96xf32>
    %48 = arith.addf %47, %5 : vector<1x96xf32>
    %49 = vector.extract_strided_slice %46 {offsets = [0, 96], sizes = [1, 96], strides = [1, 1]} : vector<1x192xf32> to vector<1x96xf32>
    %50 = vector.extract_strided_slice %48 {offsets = [0, 0], sizes = [1, 64], strides = [1, 1]} : vector<1x96xf32> to vector<1x64xf32>
    %51 = vector.extract_strided_slice %49 {offsets = [0, 0], sizes = [1, 64], strides = [1, 1]} : vector<1x96xf32> to vector<1x64xf32>
    %52 = arith.addf %50, %51 : vector<1x64xf32>
    %53 = arith.negf %52 : vector<1x64xf32>
    %54 = math.exp %53 : vector<1x64xf32>
    %cst_22 = arith.constant 1.000000e+00 : f32
    %55 = vector.broadcast %cst_22 : f32 to vector<1x64xf32>
    %56 = arith.addf %55, %54 : vector<1x64xf32>
    %57 = arith.divf %55, %56 : vector<1x64xf32>
    %58 = vector.extract_strided_slice %57 {offsets = [0, 0], sizes = [1, 32], strides = [1, 1]} : vector<1x64xf32> to vector<1x32xf32>
    %59 = vector.extract_strided_slice %57 {offsets = [0, 32], sizes = [1, 32], strides = [1, 1]} : vector<1x64xf32> to vector<1x32xf32>
    %60 = vector.extract_strided_slice %48 {offsets = [0, 64], sizes = [1, 32], strides = [1, 1]} : vector<1x96xf32> to vector<1x32xf32>
    %61 = vector.extract_strided_slice %49 {offsets = [0, 64], sizes = [1, 32], strides = [1, 1]} : vector<1x96xf32> to vector<1x32xf32>
    %62 = arith.addf %61, %7 : vector<1x32xf32>
    %63 = arith.mulf %58, %62 : vector<1x32xf32>
    %64 = arith.addf %60, %63 : vector<1x32xf32>
    %65 = math.tanh %64 : vector<1x32xf32>
    %66 = arith.subf %19, %65 : vector<1x32xf32>
    %67 = arith.mulf %59, %66 : vector<1x32xf32>
    %68 = arith.addf %65, %67 : vector<1x32xf32>
    %69 = arith.truncf %42 : vector<1x32xf32> to vector<1x32xbf16>
    %cst_23 = arith.constant dense<0.000000e+00> : vector<1x96xf32>
    %70 = tpu.matmul %69, %1, %cst_23 {dimension_numbers = #tpu.dot_dimension_numbers<[1], [0], [0], [1], [0, 0, 1, 1], [], []>} : vector<1x32xbf16>, vector<32x96xbf16>, vector<1x96xf32> -> vector<1x96xf32>
    %71 = vector.extract_strided_slice %15 {offsets = [0, 1, 0], sizes = [1, 1, 96], strides = [1, 1, 1]} : vector<1x8x96xf32> to vector<1x1x96xf32>
    %72 = vector.shape_cast %71 : vector<1x1x96xf32> to vector<1x96xf32>
    %73 = vector.extract_strided_slice %72 {offsets = [0, 0], sizes = [1, 64], strides = [1, 1]} : vector<1x96xf32> to vector<1x64xf32>
    %74 = vector.extract_strided_slice %70 {offsets = [0, 0], sizes = [1, 64], strides = [1, 1]} : vector<1x96xf32> to vector<1x64xf32>
    %75 = arith.addf %73, %74 : vector<1x64xf32>
    %76 = arith.negf %75 : vector<1x64xf32>
    %77 = math.exp %76 : vector<1x64xf32>
    %cst_24 = arith.constant 1.000000e+00 : f32
    %78 = vector.broadcast %cst_24 : f32 to vector<1x64xf32>
    %79 = arith.addf %78, %77 : vector<1x64xf32>
    %80 = arith.divf %78, %79 : vector<1x64xf32>
    %81 = vector.extract_strided_slice %80 {offsets = [0, 0], sizes = [1, 32], strides = [1, 1]} : vector<1x64xf32> to vector<1x32xf32>
    %82 = vector.extract_strided_slice %80 {offsets = [0, 32], sizes = [1, 32], strides = [1, 1]} : vector<1x64xf32> to vector<1x32xf32>
    %83 = vector.extract_strided_slice %72 {offsets = [0, 64], sizes = [1, 32], strides = [1, 1]} : vector<1x96xf32> to vector<1x32xf32>
    %84 = vector.extract_strided_slice %70 {offsets = [0, 64], sizes = [1, 32], strides = [1, 1]} : vector<1x96xf32> to vector<1x32xf32>
    %85 = arith.addf %84, %6 : vector<1x32xf32>
    %86 = arith.mulf %81, %85 : vector<1x32xf32>
    %87 = arith.addf %83, %86 : vector<1x32xf32>
    %88 = math.tanh %87 : vector<1x32xf32>
    %89 = arith.subf %42, %88 : vector<1x32xf32>
    %90 = arith.mulf %82, %89 : vector<1x32xf32>
    %91 = arith.addf %88, %90 : vector<1x32xf32>
    %92 = arith.truncf %91 : vector<1x32xf32> to vector<1x32xbf16>
    %93 = arith.truncf %68 : vector<1x32xf32> to vector<1x32xbf16>
    %94 = tpu.concatenate %92, %93 in 1 : vector<1x32xbf16>, vector<1x32xbf16> -> vector<1x64xbf16>
    %cst_25 = arith.constant dense<0.000000e+00> : vector<1x192xf32>
    %95 = tpu.matmul %94, %2, %cst_25 {dimension_numbers = #tpu.dot_dimension_numbers<[1], [0], [0], [1], [0, 0, 1, 1], [], []>} : vector<1x64xbf16>, vector<64x192xbf16>, vector<1x192xf32> -> vector<1x192xf32>
    %96 = vector.extract_strided_slice %95 {offsets = [0, 0], sizes = [1, 96], strides = [1, 1]} : vector<1x192xf32> to vector<1x96xf32>
    %97 = arith.addf %96, %5 : vector<1x96xf32>
    %98 = vector.extract_strided_slice %95 {offsets = [0, 96], sizes = [1, 96], strides = [1, 1]} : vector<1x192xf32> to vector<1x96xf32>
    %99 = vector.extract_strided_slice %97 {offsets = [0, 0], sizes = [1, 64], strides = [1, 1]} : vector<1x96xf32> to vector<1x64xf32>
    %100 = vector.extract_strided_slice %98 {offsets = [0, 0], sizes = [1, 64], strides = [1, 1]} : vector<1x96xf32> to vector<1x64xf32>
    %101 = arith.addf %99, %100 : vector<1x64xf32>
    %102 = arith.negf %101 : vector<1x64xf32>
    %103 = math.exp %102 : vector<1x64xf32>
    %cst_26 = arith.constant 1.000000e+00 : f32
    %104 = vector.broadcast %cst_26 : f32 to vector<1x64xf32>
    %105 = arith.addf %104, %103 : vector<1x64xf32>
    %106 = arith.divf %104, %105 : vector<1x64xf32>
    %107 = vector.extract_strided_slice %106 {offsets = [0, 0], sizes = [1, 32], strides = [1, 1]} : vector<1x64xf32> to vector<1x32xf32>
    %108 = vector.extract_strided_slice %106 {offsets = [0, 32], sizes = [1, 32], strides = [1, 1]} : vector<1x64xf32> to vector<1x32xf32>
    %109 = vector.extract_strided_slice %97 {offsets = [0, 64], sizes = [1, 32], strides = [1, 1]} : vector<1x96xf32> to vector<1x32xf32>
    %110 = vector.extract_strided_slice %98 {offsets = [0, 64], sizes = [1, 32], strides = [1, 1]} : vector<1x96xf32> to vector<1x32xf32>
    %111 = arith.addf %110, %7 : vector<1x32xf32>
    %112 = arith.mulf %107, %111 : vector<1x32xf32>
    %113 = arith.addf %109, %112 : vector<1x32xf32>
    %114 = math.tanh %113 : vector<1x32xf32>
    %115 = arith.subf %68, %114 : vector<1x32xf32>
    %116 = arith.mulf %108, %115 : vector<1x32xf32>
    %117 = arith.addf %114, %116 : vector<1x32xf32>
    %118 = arith.truncf %91 : vector<1x32xf32> to vector<1x32xbf16>
    %cst_27 = arith.constant dense<0.000000e+00> : vector<1x96xf32>
    %119 = tpu.matmul %118, %1, %cst_27 {dimension_numbers = #tpu.dot_dimension_numbers<[1], [0], [0], [1], [0, 0, 1, 1], [], []>} : vector<1x32xbf16>, vector<32x96xbf16>, vector<1x96xf32> -> vector<1x96xf32>
    %120 = vector.extract_strided_slice %15 {offsets = [0, 2, 0], sizes = [1, 1, 96], strides = [1, 1, 1]} : vector<1x8x96xf32> to vector<1x1x96xf32>
    %121 = vector.shape_cast %120 : vector<1x1x96xf32> to vector<1x96xf32>
    %122 = vector.extract_strided_slice %121 {offsets = [0, 0], sizes = [1, 64], strides = [1, 1]} : vector<1x96xf32> to vector<1x64xf32>
    %123 = vector.extract_strided_slice %119 {offsets = [0, 0], sizes = [1, 64], strides = [1, 1]} : vector<1x96xf32> to vector<1x64xf32>
    %124 = arith.addf %122, %123 : vector<1x64xf32>
    %125 = arith.negf %124 : vector<1x64xf32>
    %126 = math.exp %125 : vector<1x64xf32>
    %cst_28 = arith.constant 1.000000e+00 : f32
    %127 = vector.broadcast %cst_28 : f32 to vector<1x64xf32>
    %128 = arith.addf %127, %126 : vector<1x64xf32>
    %129 = arith.divf %127, %128 : vector<1x64xf32>
    %130 = vector.extract_strided_slice %129 {offsets = [0, 0], sizes = [1, 32], strides = [1, 1]} : vector<1x64xf32> to vector<1x32xf32>
    %131 = vector.extract_strided_slice %129 {offsets = [0, 32], sizes = [1, 32], strides = [1, 1]} : vector<1x64xf32> to vector<1x32xf32>
    %132 = vector.extract_strided_slice %121 {offsets = [0, 64], sizes = [1, 32], strides = [1, 1]} : vector<1x96xf32> to vector<1x32xf32>
    %133 = vector.extract_strided_slice %119 {offsets = [0, 64], sizes = [1, 32], strides = [1, 1]} : vector<1x96xf32> to vector<1x32xf32>
    %134 = arith.addf %133, %6 : vector<1x32xf32>
    %135 = arith.mulf %130, %134 : vector<1x32xf32>
    %136 = arith.addf %132, %135 : vector<1x32xf32>
    %137 = math.tanh %136 : vector<1x32xf32>
    %138 = arith.subf %91, %137 : vector<1x32xf32>
    %139 = arith.mulf %131, %138 : vector<1x32xf32>
    %140 = arith.addf %137, %139 : vector<1x32xf32>
    %141 = arith.truncf %140 : vector<1x32xf32> to vector<1x32xbf16>
    %142 = arith.truncf %117 : vector<1x32xf32> to vector<1x32xbf16>
    %143 = tpu.concatenate %141, %142 in 1 : vector<1x32xbf16>, vector<1x32xbf16> -> vector<1x64xbf16>
    %cst_29 = arith.constant dense<0.000000e+00> : vector<1x192xf32>
    %144 = tpu.matmul %143, %2, %cst_29 {dimension_numbers = #tpu.dot_dimension_numbers<[1], [0], [0], [1], [0, 0, 1, 1], [], []>} : vector<1x64xbf16>, vector<64x192xbf16>, vector<1x192xf32> -> vector<1x192xf32>
    %145 = vector.extract_strided_slice %144 {offsets = [0, 0], sizes = [1, 96], strides = [1, 1]} : vector<1x192xf32> to vector<1x96xf32>
    %146 = arith.addf %145, %5 : vector<1x96xf32>
    %147 = vector.extract_strided_slice %144 {offsets = [0, 96], sizes = [1, 96], strides = [1, 1]} : vector<1x192xf32> to vector<1x96xf32>
    %148 = vector.extract_strided_slice %146 {offsets = [0, 0], sizes = [1, 64], strides = [1, 1]} : vector<1x96xf32> to vector<1x64xf32>
    %149 = vector.extract_strided_slice %147 {offsets = [0, 0], sizes = [1, 64], strides = [1, 1]} : vector<1x96xf32> to vector<1x64xf32>
    %150 = arith.addf %148, %149 : vector<1x64xf32>
    %151 = arith.negf %150 : vector<1x64xf32>
    %152 = math.exp %151 : vector<1x64xf32>
    %cst_30 = arith.constant 1.000000e+00 : f32
    %153 = vector.broadcast %cst_30 : f32 to vector<1x64xf32>
    %154 = arith.addf %153, %152 : vector<1x64xf32>
    %155 = arith.divf %153, %154 : vector<1x64xf32>
    %156 = vector.extract_strided_slice %155 {offsets = [0, 0], sizes = [1, 32], strides = [1, 1]} : vector<1x64xf32> to vector<1x32xf32>
    %157 = vector.extract_strided_slice %155 {offsets = [0, 32], sizes = [1, 32], strides = [1, 1]} : vector<1x64xf32> to vector<1x32xf32>
    %158 = vector.extract_strided_slice %146 {offsets = [0, 64], sizes = [1, 32], strides = [1, 1]} : vector<1x96xf32> to vector<1x32xf32>
    %159 = vector.extract_strided_slice %147 {offsets = [0, 64], sizes = [1, 32], strides = [1, 1]} : vector<1x96xf32> to vector<1x32xf32>
    %160 = arith.addf %159, %7 : vector<1x32xf32>
    %161 = arith.mulf %156, %160 : vector<1x32xf32>
    %162 = arith.addf %158, %161 : vector<1x32xf32>
    %163 = math.tanh %162 : vector<1x32xf32>
    %164 = arith.subf %117, %163 : vector<1x32xf32>
    %165 = arith.mulf %157, %164 : vector<1x32xf32>
    %166 = arith.addf %163, %165 : vector<1x32xf32>
    %167 = arith.truncf %140 : vector<1x32xf32> to vector<1x32xbf16>
    %cst_31 = arith.constant dense<0.000000e+00> : vector<1x96xf32>
    %168 = tpu.matmul %167, %1, %cst_31 {dimension_numbers = #tpu.dot_dimension_numbers<[1], [0], [0], [1], [0, 0, 1, 1], [], []>} : vector<1x32xbf16>, vector<32x96xbf16>, vector<1x96xf32> -> vector<1x96xf32>
    %169 = vector.extract_strided_slice %15 {offsets = [0, 3, 0], sizes = [1, 1, 96], strides = [1, 1, 1]} : vector<1x8x96xf32> to vector<1x1x96xf32>
    %170 = vector.shape_cast %169 : vector<1x1x96xf32> to vector<1x96xf32>
    %171 = vector.extract_strided_slice %170 {offsets = [0, 0], sizes = [1, 64], strides = [1, 1]} : vector<1x96xf32> to vector<1x64xf32>
    %172 = vector.extract_strided_slice %168 {offsets = [0, 0], sizes = [1, 64], strides = [1, 1]} : vector<1x96xf32> to vector<1x64xf32>
    %173 = arith.addf %171, %172 : vector<1x64xf32>
    %174 = arith.negf %173 : vector<1x64xf32>
    %175 = math.exp %174 : vector<1x64xf32>
    %cst_32 = arith.constant 1.000000e+00 : f32
    %176 = vector.broadcast %cst_32 : f32 to vector<1x64xf32>
    %177 = arith.addf %176, %175 : vector<1x64xf32>
    %178 = arith.divf %176, %177 : vector<1x64xf32>
    %179 = vector.extract_strided_slice %178 {offsets = [0, 0], sizes = [1, 32], strides = [1, 1]} : vector<1x64xf32> to vector<1x32xf32>
    %180 = vector.extract_strided_slice %178 {offsets = [0, 32], sizes = [1, 32], strides = [1, 1]} : vector<1x64xf32> to vector<1x32xf32>
    %181 = vector.extract_strided_slice %170 {offsets = [0, 64], sizes = [1, 32], strides = [1, 1]} : vector<1x96xf32> to vector<1x32xf32>
    %182 = vector.extract_strided_slice %168 {offsets = [0, 64], sizes = [1, 32], strides = [1, 1]} : vector<1x96xf32> to vector<1x32xf32>
    %183 = arith.addf %182, %6 : vector<1x32xf32>
    %184 = arith.mulf %179, %183 : vector<1x32xf32>
    %185 = arith.addf %181, %184 : vector<1x32xf32>
    %186 = math.tanh %185 : vector<1x32xf32>
    %187 = arith.subf %140, %186 : vector<1x32xf32>
    %188 = arith.mulf %180, %187 : vector<1x32xf32>
    %189 = arith.addf %186, %188 : vector<1x32xf32>
    %190 = arith.truncf %189 : vector<1x32xf32> to vector<1x32xbf16>
    %191 = arith.truncf %166 : vector<1x32xf32> to vector<1x32xbf16>
    %192 = tpu.concatenate %190, %191 in 1 : vector<1x32xbf16>, vector<1x32xbf16> -> vector<1x64xbf16>
    %cst_33 = arith.constant dense<0.000000e+00> : vector<1x192xf32>
    %193 = tpu.matmul %192, %2, %cst_33 {dimension_numbers = #tpu.dot_dimension_numbers<[1], [0], [0], [1], [0, 0, 1, 1], [], []>} : vector<1x64xbf16>, vector<64x192xbf16>, vector<1x192xf32> -> vector<1x192xf32>
    %194 = vector.extract_strided_slice %193 {offsets = [0, 0], sizes = [1, 96], strides = [1, 1]} : vector<1x192xf32> to vector<1x96xf32>
    %195 = arith.addf %194, %5 : vector<1x96xf32>
    %196 = vector.extract_strided_slice %193 {offsets = [0, 96], sizes = [1, 96], strides = [1, 1]} : vector<1x192xf32> to vector<1x96xf32>
    %197 = vector.extract_strided_slice %195 {offsets = [0, 0], sizes = [1, 64], strides = [1, 1]} : vector<1x96xf32> to vector<1x64xf32>
    %198 = vector.extract_strided_slice %196 {offsets = [0, 0], sizes = [1, 64], strides = [1, 1]} : vector<1x96xf32> to vector<1x64xf32>
    %199 = arith.addf %197, %198 : vector<1x64xf32>
    %200 = arith.negf %199 : vector<1x64xf32>
    %201 = math.exp %200 : vector<1x64xf32>
    %cst_34 = arith.constant 1.000000e+00 : f32
    %202 = vector.broadcast %cst_34 : f32 to vector<1x64xf32>
    %203 = arith.addf %202, %201 : vector<1x64xf32>
    %204 = arith.divf %202, %203 : vector<1x64xf32>
    %205 = vector.extract_strided_slice %204 {offsets = [0, 0], sizes = [1, 32], strides = [1, 1]} : vector<1x64xf32> to vector<1x32xf32>
    %206 = vector.extract_strided_slice %204 {offsets = [0, 32], sizes = [1, 32], strides = [1, 1]} : vector<1x64xf32> to vector<1x32xf32>
    %207 = vector.extract_strided_slice %195 {offsets = [0, 64], sizes = [1, 32], strides = [1, 1]} : vector<1x96xf32> to vector<1x32xf32>
    %208 = vector.extract_strided_slice %196 {offsets = [0, 64], sizes = [1, 32], strides = [1, 1]} : vector<1x96xf32> to vector<1x32xf32>
    %209 = arith.addf %208, %7 : vector<1x32xf32>
    %210 = arith.mulf %205, %209 : vector<1x32xf32>
    %211 = arith.addf %207, %210 : vector<1x32xf32>
    %212 = math.tanh %211 : vector<1x32xf32>
    %213 = arith.subf %166, %212 : vector<1x32xf32>
    %214 = arith.mulf %206, %213 : vector<1x32xf32>
    %215 = arith.addf %212, %214 : vector<1x32xf32>
    %216 = arith.truncf %189 : vector<1x32xf32> to vector<1x32xbf16>
    %cst_35 = arith.constant dense<0.000000e+00> : vector<1x96xf32>
    %217 = tpu.matmul %216, %1, %cst_35 {dimension_numbers = #tpu.dot_dimension_numbers<[1], [0], [0], [1], [0, 0, 1, 1], [], []>} : vector<1x32xbf16>, vector<32x96xbf16>, vector<1x96xf32> -> vector<1x96xf32>
    %218 = vector.extract_strided_slice %15 {offsets = [0, 4, 0], sizes = [1, 1, 96], strides = [1, 1, 1]} : vector<1x8x96xf32> to vector<1x1x96xf32>
    %219 = vector.shape_cast %218 : vector<1x1x96xf32> to vector<1x96xf32>
    %220 = vector.extract_strided_slice %219 {offsets = [0, 0], sizes = [1, 64], strides = [1, 1]} : vector<1x96xf32> to vector<1x64xf32>
    %221 = vector.extract_strided_slice %217 {offsets = [0, 0], sizes = [1, 64], strides = [1, 1]} : vector<1x96xf32> to vector<1x64xf32>
    %222 = arith.addf %220, %221 : vector<1x64xf32>
    %223 = arith.negf %222 : vector<1x64xf32>
    %224 = math.exp %223 : vector<1x64xf32>
    %cst_36 = arith.constant 1.000000e+00 : f32
    %225 = vector.broadcast %cst_36 : f32 to vector<1x64xf32>
    %226 = arith.addf %225, %224 : vector<1x64xf32>
    %227 = arith.divf %225, %226 : vector<1x64xf32>
    %228 = vector.extract_strided_slice %227 {offsets = [0, 0], sizes = [1, 32], strides = [1, 1]} : vector<1x64xf32> to vector<1x32xf32>
    %229 = vector.extract_strided_slice %227 {offsets = [0, 32], sizes = [1, 32], strides = [1, 1]} : vector<1x64xf32> to vector<1x32xf32>
    %230 = vector.extract_strided_slice %219 {offsets = [0, 64], sizes = [1, 32], strides = [1, 1]} : vector<1x96xf32> to vector<1x32xf32>
    %231 = vector.extract_strided_slice %217 {offsets = [0, 64], sizes = [1, 32], strides = [1, 1]} : vector<1x96xf32> to vector<1x32xf32>
    %232 = arith.addf %231, %6 : vector<1x32xf32>
    %233 = arith.mulf %228, %232 : vector<1x32xf32>
    %234 = arith.addf %230, %233 : vector<1x32xf32>
    %235 = math.tanh %234 : vector<1x32xf32>
    %236 = arith.subf %189, %235 : vector<1x32xf32>
    %237 = arith.mulf %229, %236 : vector<1x32xf32>
    %238 = arith.addf %235, %237 : vector<1x32xf32>
    %239 = arith.truncf %238 : vector<1x32xf32> to vector<1x32xbf16>
    %240 = arith.truncf %215 : vector<1x32xf32> to vector<1x32xbf16>
    %241 = tpu.concatenate %239, %240 in 1 : vector<1x32xbf16>, vector<1x32xbf16> -> vector<1x64xbf16>
    %cst_37 = arith.constant dense<0.000000e+00> : vector<1x192xf32>
    %242 = tpu.matmul %241, %2, %cst_37 {dimension_numbers = #tpu.dot_dimension_numbers<[1], [0], [0], [1], [0, 0, 1, 1], [], []>} : vector<1x64xbf16>, vector<64x192xbf16>, vector<1x192xf32> -> vector<1x192xf32>
    %243 = vector.extract_strided_slice %242 {offsets = [0, 0], sizes = [1, 96], strides = [1, 1]} : vector<1x192xf32> to vector<1x96xf32>
    %244 = arith.addf %243, %5 : vector<1x96xf32>
    %245 = vector.extract_strided_slice %242 {offsets = [0, 96], sizes = [1, 96], strides = [1, 1]} : vector<1x192xf32> to vector<1x96xf32>
    %246 = vector.extract_strided_slice %244 {offsets = [0, 0], sizes = [1, 64], strides = [1, 1]} : vector<1x96xf32> to vector<1x64xf32>
    %247 = vector.extract_strided_slice %245 {offsets = [0, 0], sizes = [1, 64], strides = [1, 1]} : vector<1x96xf32> to vector<1x64xf32>
    %248 = arith.addf %246, %247 : vector<1x64xf32>
    %249 = arith.negf %248 : vector<1x64xf32>
    %250 = math.exp %249 : vector<1x64xf32>
    %cst_38 = arith.constant 1.000000e+00 : f32
    %251 = vector.broadcast %cst_38 : f32 to vector<1x64xf32>
    %252 = arith.addf %251, %250 : vector<1x64xf32>
    %253 = arith.divf %251, %252 : vector<1x64xf32>
    %254 = vector.extract_strided_slice %253 {offsets = [0, 0], sizes = [1, 32], strides = [1, 1]} : vector<1x64xf32> to vector<1x32xf32>
    %255 = vector.extract_strided_slice %253 {offsets = [0, 32], sizes = [1, 32], strides = [1, 1]} : vector<1x64xf32> to vector<1x32xf32>
    %256 = vector.extract_strided_slice %244 {offsets = [0, 64], sizes = [1, 32], strides = [1, 1]} : vector<1x96xf32> to vector<1x32xf32>
    %257 = vector.extract_strided_slice %245 {offsets = [0, 64], sizes = [1, 32], strides = [1, 1]} : vector<1x96xf32> to vector<1x32xf32>
    %258 = arith.addf %257, %7 : vector<1x32xf32>
    %259 = arith.mulf %254, %258 : vector<1x32xf32>
    %260 = arith.addf %256, %259 : vector<1x32xf32>
    %261 = math.tanh %260 : vector<1x32xf32>
    %262 = arith.subf %215, %261 : vector<1x32xf32>
    %263 = arith.mulf %255, %262 : vector<1x32xf32>
    %264 = arith.addf %261, %263 : vector<1x32xf32>
    %265 = arith.truncf %238 : vector<1x32xf32> to vector<1x32xbf16>
    %cst_39 = arith.constant dense<0.000000e+00> : vector<1x96xf32>
    %266 = tpu.matmul %265, %1, %cst_39 {dimension_numbers = #tpu.dot_dimension_numbers<[1], [0], [0], [1], [0, 0, 1, 1], [], []>} : vector<1x32xbf16>, vector<32x96xbf16>, vector<1x96xf32> -> vector<1x96xf32>
    %267 = vector.extract_strided_slice %15 {offsets = [0, 5, 0], sizes = [1, 1, 96], strides = [1, 1, 1]} : vector<1x8x96xf32> to vector<1x1x96xf32>
    %268 = vector.shape_cast %267 : vector<1x1x96xf32> to vector<1x96xf32>
    %269 = vector.extract_strided_slice %268 {offsets = [0, 0], sizes = [1, 64], strides = [1, 1]} : vector<1x96xf32> to vector<1x64xf32>
    %270 = vector.extract_strided_slice %266 {offsets = [0, 0], sizes = [1, 64], strides = [1, 1]} : vector<1x96xf32> to vector<1x64xf32>
    %271 = arith.addf %269, %270 : vector<1x64xf32>
    %272 = arith.negf %271 : vector<1x64xf32>
    %273 = math.exp %272 : vector<1x64xf32>
    %cst_40 = arith.constant 1.000000e+00 : f32
    %274 = vector.broadcast %cst_40 : f32 to vector<1x64xf32>
    %275 = arith.addf %274, %273 : vector<1x64xf32>
    %276 = arith.divf %274, %275 : vector<1x64xf32>
    %277 = vector.extract_strided_slice %276 {offsets = [0, 0], sizes = [1, 32], strides = [1, 1]} : vector<1x64xf32> to vector<1x32xf32>
    %278 = vector.extract_strided_slice %276 {offsets = [0, 32], sizes = [1, 32], strides = [1, 1]} : vector<1x64xf32> to vector<1x32xf32>
    %279 = vector.extract_strided_slice %268 {offsets = [0, 64], sizes = [1, 32], strides = [1, 1]} : vector<1x96xf32> to vector<1x32xf32>
    %280 = vector.extract_strided_slice %266 {offsets = [0, 64], sizes = [1, 32], strides = [1, 1]} : vector<1x96xf32> to vector<1x32xf32>
    %281 = arith.addf %280, %6 : vector<1x32xf32>
    %282 = arith.mulf %277, %281 : vector<1x32xf32>
    %283 = arith.addf %279, %282 : vector<1x32xf32>
    %284 = math.tanh %283 : vector<1x32xf32>
    %285 = arith.subf %238, %284 : vector<1x32xf32>
    %286 = arith.mulf %278, %285 : vector<1x32xf32>
    %287 = arith.addf %284, %286 : vector<1x32xf32>
    %288 = arith.truncf %287 : vector<1x32xf32> to vector<1x32xbf16>
    %289 = arith.truncf %264 : vector<1x32xf32> to vector<1x32xbf16>
    %290 = tpu.concatenate %288, %289 in 1 : vector<1x32xbf16>, vector<1x32xbf16> -> vector<1x64xbf16>
    %cst_41 = arith.constant dense<0.000000e+00> : vector<1x192xf32>
    %291 = tpu.matmul %290, %2, %cst_41 {dimension_numbers = #tpu.dot_dimension_numbers<[1], [0], [0], [1], [0, 0, 1, 1], [], []>} : vector<1x64xbf16>, vector<64x192xbf16>, vector<1x192xf32> -> vector<1x192xf32>
    %292 = vector.extract_strided_slice %291 {offsets = [0, 0], sizes = [1, 96], strides = [1, 1]} : vector<1x192xf32> to vector<1x96xf32>
    %293 = arith.addf %292, %5 : vector<1x96xf32>
    %294 = vector.extract_strided_slice %291 {offsets = [0, 96], sizes = [1, 96], strides = [1, 1]} : vector<1x192xf32> to vector<1x96xf32>
    %295 = vector.extract_strided_slice %293 {offsets = [0, 0], sizes = [1, 64], strides = [1, 1]} : vector<1x96xf32> to vector<1x64xf32>
    %296 = vector.extract_strided_slice %294 {offsets = [0, 0], sizes = [1, 64], strides = [1, 1]} : vector<1x96xf32> to vector<1x64xf32>
    %297 = arith.addf %295, %296 : vector<1x64xf32>
    %298 = arith.negf %297 : vector<1x64xf32>
    %299 = math.exp %298 : vector<1x64xf32>
    %cst_42 = arith.constant 1.000000e+00 : f32
    %300 = vector.broadcast %cst_42 : f32 to vector<1x64xf32>
    %301 = arith.addf %300, %299 : vector<1x64xf32>
    %302 = arith.divf %300, %301 : vector<1x64xf32>
    %303 = vector.extract_strided_slice %302 {offsets = [0, 0], sizes = [1, 32], strides = [1, 1]} : vector<1x64xf32> to vector<1x32xf32>
    %304 = vector.extract_strided_slice %302 {offsets = [0, 32], sizes = [1, 32], strides = [1, 1]} : vector<1x64xf32> to vector<1x32xf32>
    %305 = vector.extract_strided_slice %293 {offsets = [0, 64], sizes = [1, 32], strides = [1, 1]} : vector<1x96xf32> to vector<1x32xf32>
    %306 = vector.extract_strided_slice %294 {offsets = [0, 64], sizes = [1, 32], strides = [1, 1]} : vector<1x96xf32> to vector<1x32xf32>
    %307 = arith.addf %306, %7 : vector<1x32xf32>
    %308 = arith.mulf %303, %307 : vector<1x32xf32>
    %309 = arith.addf %305, %308 : vector<1x32xf32>
    %310 = math.tanh %309 : vector<1x32xf32>
    %311 = arith.subf %264, %310 : vector<1x32xf32>
    %312 = arith.mulf %304, %311 : vector<1x32xf32>
    %313 = arith.addf %310, %312 : vector<1x32xf32>
    %314 = arith.truncf %287 : vector<1x32xf32> to vector<1x32xbf16>
    %cst_43 = arith.constant dense<0.000000e+00> : vector<1x96xf32>
    %315 = tpu.matmul %314, %1, %cst_43 {dimension_numbers = #tpu.dot_dimension_numbers<[1], [0], [0], [1], [0, 0, 1, 1], [], []>} : vector<1x32xbf16>, vector<32x96xbf16>, vector<1x96xf32> -> vector<1x96xf32>
    %316 = vector.extract_strided_slice %15 {offsets = [0, 6, 0], sizes = [1, 1, 96], strides = [1, 1, 1]} : vector<1x8x96xf32> to vector<1x1x96xf32>
    %317 = vector.shape_cast %316 : vector<1x1x96xf32> to vector<1x96xf32>
    %318 = vector.extract_strided_slice %317 {offsets = [0, 0], sizes = [1, 64], strides = [1, 1]} : vector<1x96xf32> to vector<1x64xf32>
    %319 = vector.extract_strided_slice %315 {offsets = [0, 0], sizes = [1, 64], strides = [1, 1]} : vector<1x96xf32> to vector<1x64xf32>
    %320 = arith.addf %318, %319 : vector<1x64xf32>
    %321 = arith.negf %320 : vector<1x64xf32>
    %322 = math.exp %321 : vector<1x64xf32>
    %cst_44 = arith.constant 1.000000e+00 : f32
    %323 = vector.broadcast %cst_44 : f32 to vector<1x64xf32>
    %324 = arith.addf %323, %322 : vector<1x64xf32>
    %325 = arith.divf %323, %324 : vector<1x64xf32>
    %326 = vector.extract_strided_slice %325 {offsets = [0, 0], sizes = [1, 32], strides = [1, 1]} : vector<1x64xf32> to vector<1x32xf32>
    %327 = vector.extract_strided_slice %325 {offsets = [0, 32], sizes = [1, 32], strides = [1, 1]} : vector<1x64xf32> to vector<1x32xf32>
    %328 = vector.extract_strided_slice %317 {offsets = [0, 64], sizes = [1, 32], strides = [1, 1]} : vector<1x96xf32> to vector<1x32xf32>
    %329 = vector.extract_strided_slice %315 {offsets = [0, 64], sizes = [1, 32], strides = [1, 1]} : vector<1x96xf32> to vector<1x32xf32>
    %330 = arith.addf %329, %6 : vector<1x32xf32>
    %331 = arith.mulf %326, %330 : vector<1x32xf32>
    %332 = arith.addf %328, %331 : vector<1x32xf32>
    %333 = math.tanh %332 : vector<1x32xf32>
    %334 = arith.subf %287, %333 : vector<1x32xf32>
    %335 = arith.mulf %327, %334 : vector<1x32xf32>
    %336 = arith.addf %333, %335 : vector<1x32xf32>
    %337 = arith.truncf %336 : vector<1x32xf32> to vector<1x32xbf16>
    %338 = arith.truncf %313 : vector<1x32xf32> to vector<1x32xbf16>
    %339 = tpu.concatenate %337, %338 in 1 : vector<1x32xbf16>, vector<1x32xbf16> -> vector<1x64xbf16>
    %cst_45 = arith.constant dense<0.000000e+00> : vector<1x192xf32>
    %340 = tpu.matmul %339, %2, %cst_45 {dimension_numbers = #tpu.dot_dimension_numbers<[1], [0], [0], [1], [0, 0, 1, 1], [], []>} : vector<1x64xbf16>, vector<64x192xbf16>, vector<1x192xf32> -> vector<1x192xf32>
    %341 = vector.extract_strided_slice %340 {offsets = [0, 0], sizes = [1, 96], strides = [1, 1]} : vector<1x192xf32> to vector<1x96xf32>
    %342 = arith.addf %341, %5 : vector<1x96xf32>
    %343 = vector.extract_strided_slice %340 {offsets = [0, 96], sizes = [1, 96], strides = [1, 1]} : vector<1x192xf32> to vector<1x96xf32>
    %344 = vector.extract_strided_slice %342 {offsets = [0, 0], sizes = [1, 64], strides = [1, 1]} : vector<1x96xf32> to vector<1x64xf32>
    %345 = vector.extract_strided_slice %343 {offsets = [0, 0], sizes = [1, 64], strides = [1, 1]} : vector<1x96xf32> to vector<1x64xf32>
    %346 = arith.addf %344, %345 : vector<1x64xf32>
    %347 = arith.negf %346 : vector<1x64xf32>
    %348 = math.exp %347 : vector<1x64xf32>
    %cst_46 = arith.constant 1.000000e+00 : f32
    %349 = vector.broadcast %cst_46 : f32 to vector<1x64xf32>
    %350 = arith.addf %349, %348 : vector<1x64xf32>
    %351 = arith.divf %349, %350 : vector<1x64xf32>
    %352 = vector.extract_strided_slice %351 {offsets = [0, 0], sizes = [1, 32], strides = [1, 1]} : vector<1x64xf32> to vector<1x32xf32>
    %353 = vector.extract_strided_slice %351 {offsets = [0, 32], sizes = [1, 32], strides = [1, 1]} : vector<1x64xf32> to vector<1x32xf32>
    %354 = vector.extract_strided_slice %342 {offsets = [0, 64], sizes = [1, 32], strides = [1, 1]} : vector<1x96xf32> to vector<1x32xf32>
    %355 = vector.extract_strided_slice %343 {offsets = [0, 64], sizes = [1, 32], strides = [1, 1]} : vector<1x96xf32> to vector<1x32xf32>
    %356 = arith.addf %355, %7 : vector<1x32xf32>
    %357 = arith.mulf %352, %356 : vector<1x32xf32>
    %358 = arith.addf %354, %357 : vector<1x32xf32>
    %359 = math.tanh %358 : vector<1x32xf32>
    %360 = arith.subf %313, %359 : vector<1x32xf32>
    %361 = arith.mulf %353, %360 : vector<1x32xf32>
    %362 = arith.addf %359, %361 : vector<1x32xf32>
    %363 = arith.truncf %336 : vector<1x32xf32> to vector<1x32xbf16>
    %cst_47 = arith.constant dense<0.000000e+00> : vector<1x96xf32>
    %364 = tpu.matmul %363, %1, %cst_47 {dimension_numbers = #tpu.dot_dimension_numbers<[1], [0], [0], [1], [0, 0, 1, 1], [], []>} : vector<1x32xbf16>, vector<32x96xbf16>, vector<1x96xf32> -> vector<1x96xf32>
    %365 = vector.extract_strided_slice %15 {offsets = [0, 7, 0], sizes = [1, 1, 96], strides = [1, 1, 1]} : vector<1x8x96xf32> to vector<1x1x96xf32>
    %366 = vector.shape_cast %365 : vector<1x1x96xf32> to vector<1x96xf32>
    %367 = vector.extract_strided_slice %366 {offsets = [0, 0], sizes = [1, 64], strides = [1, 1]} : vector<1x96xf32> to vector<1x64xf32>
    %368 = vector.extract_strided_slice %364 {offsets = [0, 0], sizes = [1, 64], strides = [1, 1]} : vector<1x96xf32> to vector<1x64xf32>
    %369 = arith.addf %367, %368 : vector<1x64xf32>
    %370 = arith.negf %369 : vector<1x64xf32>
    %371 = math.exp %370 : vector<1x64xf32>
    %cst_48 = arith.constant 1.000000e+00 : f32
    %372 = vector.broadcast %cst_48 : f32 to vector<1x64xf32>
    %373 = arith.addf %372, %371 : vector<1x64xf32>
    %374 = arith.divf %372, %373 : vector<1x64xf32>
    %375 = vector.extract_strided_slice %374 {offsets = [0, 0], sizes = [1, 32], strides = [1, 1]} : vector<1x64xf32> to vector<1x32xf32>
    %376 = vector.extract_strided_slice %374 {offsets = [0, 32], sizes = [1, 32], strides = [1, 1]} : vector<1x64xf32> to vector<1x32xf32>
    %377 = vector.extract_strided_slice %366 {offsets = [0, 64], sizes = [1, 32], strides = [1, 1]} : vector<1x96xf32> to vector<1x32xf32>
    %378 = vector.extract_strided_slice %364 {offsets = [0, 64], sizes = [1, 32], strides = [1, 1]} : vector<1x96xf32> to vector<1x32xf32>
    %379 = arith.addf %378, %6 : vector<1x32xf32>
    %380 = arith.mulf %375, %379 : vector<1x32xf32>
    %381 = arith.addf %377, %380 : vector<1x32xf32>
    %382 = math.tanh %381 : vector<1x32xf32>
    %383 = arith.subf %336, %382 : vector<1x32xf32>
    %384 = arith.mulf %376, %383 : vector<1x32xf32>
    %385 = arith.addf %382, %384 : vector<1x32xf32>
    %386 = arith.truncf %385 : vector<1x32xf32> to vector<1x32xbf16>
    %387 = arith.truncf %362 : vector<1x32xf32> to vector<1x32xbf16>
    %388 = tpu.concatenate %386, %387 in 1 : vector<1x32xbf16>, vector<1x32xbf16> -> vector<1x64xbf16>
    %cst_49 = arith.constant dense<0.000000e+00> : vector<1x192xf32>
    %389 = tpu.matmul %388, %2, %cst_49 {dimension_numbers = #tpu.dot_dimension_numbers<[1], [0], [0], [1], [0, 0, 1, 1], [], []>} : vector<1x64xbf16>, vector<64x192xbf16>, vector<1x192xf32> -> vector<1x192xf32>
    %390 = vector.extract_strided_slice %389 {offsets = [0, 0], sizes = [1, 96], strides = [1, 1]} : vector<1x192xf32> to vector<1x96xf32>
    %391 = arith.addf %390, %5 : vector<1x96xf32>
    %392 = vector.extract_strided_slice %389 {offsets = [0, 96], sizes = [1, 96], strides = [1, 1]} : vector<1x192xf32> to vector<1x96xf32>
    %393 = vector.extract_strided_slice %391 {offsets = [0, 0], sizes = [1, 64], strides = [1, 1]} : vector<1x96xf32> to vector<1x64xf32>
    %394 = vector.extract_strided_slice %392 {offsets = [0, 0], sizes = [1, 64], strides = [1, 1]} : vector<1x96xf32> to vector<1x64xf32>
    %395 = arith.addf %393, %394 : vector<1x64xf32>
    %396 = arith.negf %395 : vector<1x64xf32>
    %397 = math.exp %396 : vector<1x64xf32>
    %cst_50 = arith.constant 1.000000e+00 : f32
    %398 = vector.broadcast %cst_50 : f32 to vector<1x64xf32>
    %399 = arith.addf %398, %397 : vector<1x64xf32>
    %400 = arith.divf %398, %399 : vector<1x64xf32>
    %401 = vector.extract_strided_slice %400 {offsets = [0, 0], sizes = [1, 32], strides = [1, 1]} : vector<1x64xf32> to vector<1x32xf32>
    %402 = vector.extract_strided_slice %400 {offsets = [0, 32], sizes = [1, 32], strides = [1, 1]} : vector<1x64xf32> to vector<1x32xf32>
    %403 = vector.extract_strided_slice %391 {offsets = [0, 64], sizes = [1, 32], strides = [1, 1]} : vector<1x96xf32> to vector<1x32xf32>
    %404 = vector.extract_strided_slice %392 {offsets = [0, 64], sizes = [1, 32], strides = [1, 1]} : vector<1x96xf32> to vector<1x32xf32>
    %405 = arith.addf %404, %7 : vector<1x32xf32>
    %406 = arith.mulf %401, %405 : vector<1x32xf32>
    %407 = arith.addf %403, %406 : vector<1x32xf32>
    %408 = math.tanh %407 : vector<1x32xf32>
    %409 = arith.subf %362, %408 : vector<1x32xf32>
    %410 = arith.mulf %402, %409 : vector<1x32xf32>
    %411 = arith.addf %408, %410 : vector<1x32xf32>
    %c0_51 = arith.constant 0 : index
    %c0_52 = arith.constant 0 : index
    %c0_53 = arith.constant 0 : index
    %412 = vector.load %arg6[%c0_51, %c0_52, %c0_53] : memref<2x1x32xf32, #tpu.memory_space<vmem>>, vector<1x1x32xf32>
    %413 = vector.shape_cast %412 : vector<1x1x32xf32> to vector<1x32xf32>
    %414 = vector.shape_cast %385 : vector<1x32xf32> to vector<1x1x32xf32>
    tpu.vector_store %arg6[%c0_51, %c0_52, %c0_53], %414 {strides = array<i32>} : memref<2x1x32xf32, #tpu.memory_space<vmem>>, vector<1x1x32xf32>,
    %c1_54 = arith.constant 1 : index
    %c0_55 = arith.constant 0 : index
    %c0_56 = arith.constant 0 : index
    %415 = vector.load %arg6[%c1_54, %c0_55, %c0_56] : memref<2x1x32xf32, #tpu.memory_space<vmem>>, vector<1x1x32xf32>
    %416 = vector.shape_cast %415 : vector<1x1x32xf32> to vector<1x32xf32>
    %417 = vector.shape_cast %411 : vector<1x32xf32> to vector<1x1x32xf32>
    tpu.vector_store %arg6[%c1_54, %c0_55, %c0_56], %417 {strides = array<i32>} : memref<2x1x32xf32, #tpu.memory_space<vmem>>, vector<1x1x32xf32>,
    %418 = arith.truncf %411 : vector<1x32xf32> to vector<1x32xbf16>
    %cst_57 = arith.constant dense<0.000000e+00> : vector<1x16xf32>
    %419 = tpu.matmul %418, %3, %cst_57 {dimension_numbers = #tpu.dot_dimension_numbers<[1], [0], [0], [1], [0, 0, 1, 1], [], []>} : vector<1x32xbf16>, vector<32x16xbf16>, vector<1x16xf32> -> vector<1x16xf32>
    %420 = arith.addf %419, %8 : vector<1x16xf32>
    %c0_58 = arith.constant 0 : index
    %c0_59 = arith.constant 0 : index
    %421 = vector.load %arg5[%c0_58, %c0_59] : memref<1x16xf32, #tpu.memory_space<vmem>>, vector<1x16xf32>
    tpu.vector_store %arg5[%c0_58, %c0_59], %420 {strides = array<i32>} : memref<1x16xf32, #tpu.memory_space<vmem>>, vector<1x16xf32>,
    return
  }
  func.func @transform_0(%arg0: i32) -> (i32, i32, i32) {
    %c0_i32 = arith.constant 0 : i32
    %c0_i32_0 = arith.constant 0 : i32
    %c0_i32_1 = arith.constant 0 : i32
    return %arg0, %c0_i32, %c0_i32_0 : i32, i32, i32
  }
  func.func @transform_1(%arg0: i32) -> (i32, i32, i32) {
    %c0_i32 = arith.constant 0 : i32
    %c0_i32_0 = arith.constant 0 : i32
    %c0_i32_1 = arith.constant 0 : i32
    return %c0_i32, %arg0, %c0_i32_0 : i32, i32, i32
  }
  func.func @transform_2(%arg0: i32) -> (i32, i32) {
    %c0_i32 = arith.constant 0 : i32
    %c0_i32_0 = arith.constant 0 : i32
    %c0_i32_1 = arith.constant 0 : i32
    return %c0_i32, %c0_i32_0 : i32, i32
  }
  func.func @transform_3(%arg0: i32) -> (i32, i32) {
    %c0_i32 = arith.constant 0 : i32
    %c0_i32_0 = arith.constant 0 : i32
    %c0_i32_1 = arith.constant 0 : i32
    return %c0_i32, %c0_i32_0 : i32, i32
  }
  func.func @transform_4(%arg0: i32) -> (i32, i32) {
    %c0_i32 = arith.constant 0 : i32
    %c0_i32_0 = arith.constant 0 : i32
    return %arg0, %c0_i32 : i32, i32
  }
  func.func @transform_5(%arg0: i32) -> (i32, i32, i32) {
    %c0_i32 = arith.constant 0 : i32
    %c0_i32_0 = arith.constant 0 : i32
    %c0_i32_1 = arith.constant 0 : i32
    return %c0_i32, %arg0, %c0_i32_0 : i32, i32, i32
  }
}

</mosaic_0001>

<bundles_post_ra>
// kernel: encoder_rnn_forward.1
= control target key start
LH: loop header
LB: loop body
LE: loop exit
PB: predicated region body
PF: predicated region fallthrough
CT: control target
= control target key end

     0   :  { %11 = vsyncpa [#allocation3], 0  ;;  %s2677_s0 = inlined_call_operand.vmem [shape: f32[1,8,32], index: 0, kind: input, shape index: {}]   ;;  %s2678_s1 = inlined_call_operand.vmem [shape: f32[2,1,32], index: 1, kind: input, shape index: {}]   ;;  %s2679_s2 = inlined_call_operand.hbm [shape: bf16[128,256], index: 2, kind: input, shape index: {}]   ;;  %s2680_s3 = inlined_call_operand.vmem [shape: f32[8,128], index: 3, kind: input, shape index: {}]   ;;  %s2681_s4 = inlined_call_operand.hbm [shape: f32[1,16], index: 4, kind: output, shape index: {0}]   ;;  %s2682_s5 = inlined_call_operand.hbm [shape: f32[2,1,32], index: 5, kind: output, shape index: {1}]  }
   0x1   :  { %12 = vsyncpa [#allocation4], 0 }
   0x2   :  { %13 = vsyncpa [#allocation7], 0  ;;  %s2155_s18 = smov [#allocation2]   ;;  %s2083_s22 = scalar_lea.hbm %s2679_s2, 2048 }
   0x3   :  { %s23_s19 = sshll.u32 %s2155_s18, 4  ;;  %p2084_p0 = scmp.ne.s32.totalorder %s2679_s2, %s2083_s22  ;;  %s24_s19 = int_to_ptr.vmem [resolvable:$true] %s23_s19 }
   0x4   :  { %p2087_p1 = scmp.lt.u32.totalorder %s2083_s22, %s2679_s2 }
   0x6   :  { %p2089_p2 = pnand %p2087_p1, %p2084_p0 }
   0x8   :  { %2092 = shalt.err (!%p2089_p2)
}
   0x9   :  { %s2093_s27 = scalar_lea.vmem %s24_s19, 2048  ;;  %p2098_p4 = scmp.lt.s32.totalorder %s24_s19, %s24_s19 }
   0xa   :  { %p2094_p3 = scmp.ne.s32.totalorder %s24_s19, %s2093_s27  ;;  %p2099_p5 = scmp.lt.s32.totalorder %s2093_s27, %s2093_s27 }
   0xc   :  { %p2100_p6 = por %p2099_p5, %p2098_p4 }
   0xe   :  { %p2101_p7 = pnand %p2100_p6, %p2094_p3 }
  0x10   :  { %2104 = shalt.err (!%p2101_p7)
}
  0x11   :  { %s2156_s28 = smov 128   ;;  %s2157_s29 = smov 8  }
  0x12   :  { %29 = dma.hbm_to_vmem [thread:$0]  %s2679_s2, 2048, %s24_s19, [#allocation3], %s2156_s28, %s2156_s28, %s2157_s29  }
  0x13   :  { %2149 = dma.done.wait [#allocation3], 2048  }
  0x14   :  { %2150 = vsyncadd [#allocation3], 4294965248  ;;  %v2158_v0 = vmov 0.0   ;;  %vm2159_vm0 = vmmov 0   ;;  %v1958_v1 = vld [vmem:[#allocation2] ss:$8 sps:$4 sm:$0xff]   ;;  %v209_v33 = vlaneseq }
  0x15   :  { %1864 = vmatprep.subr.bf16.mxu0 %v2158_v0  ;;  %1872 = vmatprep.subr.bf16.mxu1 %v2158_v0  ;;  %v2217_v2 = vld [vmem:[#allocation2 + $0x4] ss:$8 sps:$4 sm:$0xff]   ;;  %v1960_v3 = vld [vmem:[#allocation2 + $0x10] ss:$8 sps:$4 sm:$0xff]   ;;  %v2221_v4 = vld [vmem:[#allocation2 + $0x14] ss:$8 sps:$4 sm:$0xff]  }
  0x16   :  { %1868 = vmatprep.mubr.msk.bf16.mxu0 %vm2159_vm0, %v2158_v0  ;;  %1876 = vmatprep.mubr.msk.bf16.mxu1 %vm2159_vm0, %v2158_v0  ;;  %v61_v5 = vld [vmem:[%s2677_s0] sm:$0xff]  ;;  %s2160_s12 = smov 64   ;;  %vm79_vm1 = vcmask 261120   ;;  %v2161_v31 = vmov 1966171168   ;;  %v2255_v35 = vshrl.u32 %v209_v33, 7 }
  0x17   :  { %1865 = vmatpush3.bf16.msra.mxu0 %v1958_v1  ;;  %1873 = vmatpush3.bf16.msra.mxu1 %v2217_v2  ;;  %v123_v6 = vld [vmem:[%s2678_s1] sm:$0x1]  ;;  %v58_v7 = vld [vmem:[%s2680_s3 + $0x2] sm:$0x1]  ;;  %v62_v8 = vpack.c.bf16 %v61_v5, %v61_v5  ;;  %v207_v32 = vunpack.c.l.s4 %v2161_v31  ;;  %s2162_s14 = smov 32   ;;  %v2163_v56 = vmov 0  }
  0x18   :  { %1866 = vmatprep.subr.bf16.mxu0 %v2158_v0  ;;  %1874 = vmatprep.subr.bf16.mxu1 %v2158_v0  ;;  %v126_v9 = vpack.c.bf16 %v123_v6, %v123_v6  ;;  %v1784_v20 = vld [vmem:[%s2680_s3] ss:$0 sm:$0xff]  ;;  %v227_v40 = vsub.s32 0, %v2255_v35  ;;  %v2267_v44 = vld [vmem:[#allocation2 + $0x24] ss:$8 sps:$4 sm:$0xff]   ;;  %vm289_vm2 = vcmask 523264  }
  0x19   :  { %190 = vrot.lane.b32.xlu0 %v58_v7, %s2160_s12  ;;  %v208_v34 = vunpack.c.0.s8 %v207_v32  ;;  %v2269_v45 = vld [vmem:[#allocation2 + $0x20] ss:$8 sps:$4 sm:$0xff]   ;;  %v2271_v46 = vld [vmem:[#allocation2 + $0x34] ss:$8 sps:$4 sm:$0xff]   ;;  %v2276_v47 = vld [vmem:[#allocation2 + $0x30] ss:$8 sps:$4 sm:$0xff]  }
  0x1a   :  { %v2279_v48 = vld [vmem:[#allocation2 + $0x44] ss:$8 sps:$4 sm:$0xff]   ;;  %v2284_v50 = vld [vmem:[%s2678_s1 + $0x1] sm:$0x1]  ;;  %v2290_v53 = vld [vmem:[#allocation2 + $0x54] ss:$8 sps:$4 sm:$0xff]  }
  0x1b   :  { %1867 = vmatpush3.bf16.msra.mxu0 %v1960_v3  ;;  %1875 = vmatpush3.bf16.msra.mxu1 %v2221_v4  ;;  %v2258_v36 = vsub.s32 %v208_v34, %v2255_v35  ;;  %v2287_v52 = vld [vmem:[#allocation2 + $0x40] ss:$8 sps:$4 sm:$0xff]   ;;  %v239_v54 = vpack.c.bf16 %v2284_v50, %v2284_v50  ;;  %v2296_v55 = vld [vmem:[#allocation2 + $0x50] ss:$8 sps:$4 sm:$0xff]   ;;  %s2164_s18 = smov 96   ;;  %vm1683_vm3 = vcmask 261127  }
  0x1c   :  { %1880 = vmatprep.subr.bf16.mxu1 %v2158_v0  ;;  %292 = vmatprep.subr.bf16.mxu0 %v2267_v44  ;;  %v59_v60 = vld [vmem:[%s2680_s3 + $0x3] sm:$0x1]  ;;  %vm1690_vm4 = vcmask 253952   ;;  %s2165_s23 = smov [#allocation6]  }
  0x1d   :  { %s1768_s24 = sshll.u32 %s2165_s23, 4  ;;  %s1769_s24 = int_to_ptr.vmem [resolvable:$true] %s1768_s24 }
  0x1e   :  { %1869 = vmatmul.mubr.msk.bf16.vlgmr.msra.gmra.mrb[0].mxu0 %vm79_vm1, %v62_v8  ;;  %1877 = vmatmul.mubr.msk.bf16.vlgmr.msra.gmra.mrb[0].mxu1 %vm79_vm1, %v126_v9  ;;  %s2105_s25 = scalar_lea.vmem %s1769_s24, 32  ;;  %p2110_p9 = scmp.lt.s32.totalorder %s1769_s24, %s1769_s24 }
  0x1f   :  { %1881 = vmatpush3.bf16.msra.mxu1 %v2217_v2  ;;  %1884 = vmatprep.mubr.msk.bf16.mxu1 %vm2159_vm0, %v2158_v0  ;;  %p2106_p8 = scmp.ne.s32.totalorder %s1769_s24, %s2105_s25  ;;  %p2111_p10 = scmp.lt.s32.totalorder %s2105_s25, %s2105_s25 }
  0x20   :  { %1882 = vmatprep.subr.bf16.mxu1 %v2158_v0  ;;  %293 = vmatpush1.bf16.msra.mxu0 %v2269_v45 }
  0x21   :  { %294 = vmatprep.subr.bf16.mxu0 %v2271_v46  ;;  %324 = vmatprep.mubr.bf16.mxu0 %v2163_v56  ;;  %p2112_p11 = por %p2111_p10, %p2110_p9 }
  0x23   :  { %1883 = vmatpush3.bf16.msra.mxu1 %v2221_v4  ;;  %p2113_p12 = pnand %p2112_p11, %p2106_p8 }
  0x24   :  { %496 = vmatprep.subr.bf16.mxu1 %v2267_v44  ;;  %295 = vmatpush1.bf16.msra.mxu0 %v2276_v47 }
  0x25   :  { %296 = vmatprep.subr.bf16.mxu0 %v2279_v48 }
  0x28   :  { %297 = vmatpush1.bf16.msra.mxu0 %v2287_v52 }
  0x29   :  { %298 = vmatprep.subr.bf16.mxu0 %v2290_v53 }
  0x2c   :  { %299 = vmatpush1.bf16.msra.mxu0 %v2296_v55 }
  0x2d   :  { %1888 = vmatprep.subr.bf16.mxu0 %v2158_v0 }
  0x8b   :  { %v2243_v10 = vpop.permute.xlu0 %190 }
  0xf1   :  { %v117_v11 = vpop.f32.mrb[0].mxu0  ;;  %v176_v12 = vpop.f32.mrb[0].mxu1 }
  0xf2   :  { %v1870_v13 = vpop.f32.mrb[1].mxu0  ;;  %v193_v14 = vadd.f32 %v2243_v10, %v176_v12  ;;  %v1878_v15 = vpop.f32.mrb[1].mxu1  ;;  %v2250_v21 = vadd.f32 %v1784_v20, %v117_v11 }
  0xf3   :  { %v120_v16 = vpop.f32.mrb[2].mxu0  ;;  %v179_v17 = vpop.f32.mrb[2].mxu1 }
  0xf4   :  { %v1871_v18 = vpop.f32.mrb[3].mxu0  ;;  %195 = vrot.lane.b32.xlu0 %v193_v14, %s2160_s12  ;;  %v1879_v19 = vpop.f32.mrb[3].mxu1  ;;  %v182_v22 = vadd.f32 %v176_v12, %v2250_v21 }
  0xf5   :  { %v2342_v18 = vld [vmem:[%s2680_s3 + $0x1] sm:$0x1] }
  0xf6   :  { %v1792_v23 = vmul.f32 -1.442695, %v182_v22 }
  0xf8   :  { %1976 = vpow2.f32 %v1792_v23 }
 0x102   :  { %v1977_v24 = vpop.eup %1976 }
 0x103   :  { %v186_v25 = vadd.f32 1.0, %v1977_v24 }
 0x105   :  { %1978 = vrcp.f32 %v186_v25 }
 0x10f   :  { %v1979_v26 = vpop.eup %1978 }
 0x166   :  { %v196_v27 = vpop.permute.xlu0 %195 }
 0x167   :  { %v198_v28 = vmul.f32 %v1979_v26, %v196_v27 }
 0x169   :  { %200 = vrot.lane.b32.xlu1 %v198_v28, %s2160_s12 }
 0x1db   :  { %v201_v29 = vpop.permute.xlu1 %200 }
 0x1dc   :  { %v203_v30 = vadd.f32 %v201_v29, %v2250_v21 }
 0x1de   :  { %1980 = vtanh.f32 %v203_v30 }
 0x1e8   :  { %v1981_v37 = vpop.eup %1980 }
 0x1e9   :  { %v212_v38 = vrot.slane %v1981_v37, %v2258_v36 }
 0x1eb   :  { %v219_v39 = vrot.slane %v212_v38, %v2258_v36 }
 0x1ed   :  { %220 = vrot.lane.b32.xlu1 %v219_v39, %s2160_s12 }
 0x25f   :  { %v221_v41 = vpop.permute.xlu1 %220 }
 0x260   :  { %v223_v42 = vsub.f32 %v123_v6, %v221_v41 }
 0x262   :  { %v228_v43 = vrot.slane %v223_v42, %v227_v40 }
 0x264   :  { %229 = vrot.lane.b32.xlu0 %v228_v43, %s2162_s14 }
 0x2d6   :  { %v230_v49 = vpop.permute.xlu0 %229 }
 0x2d7   :  { %v232_v51 = vmul.f32 %v1979_v26, %v230_v49 }
 0x2d9   :  { %234 = vrot.lane.b32.xlu1 %v232_v51, %s2162_s14 }
 0x2dd   :  { %244 = vrot.lane.b32.xlu1 %v239_v54, %s2162_s14 }
 0x34b   :  { %v235_v57 = vpop.permute.xlu1 %234 }
 0x34c   :  { %v2303_v58 = vadd.f32 %v1981_v37, %v235_v57 }
 0x34e   :  { %v238_v59 = vpack.c.bf16 %v2303_v58, %v2303_v58 }
 0x34f   :  { %v245_v61 = vpop.permute.xlu1 %244 }
 0x350   :  { %241 = vrot.lane.b32.xlu0 %v238_v59, %s2160_s12 }
 0x354   :  { %350 = vrot.lane.b32.xlu0 %v59_v60, %s2162_s14 }
 0x3c2   :  { %v242_v62 = vpop.permute.xlu0 %241 }
 0x3c3   :  { %v248_v63 = vsel %vm79_vm1, %v242_v62, %v245_v61  ;;  %1885 = vmatmul.mubr.msk.bf16.vlgmr.msra.gmra.mrb[4].mxu1 %vm79_vm1, %v242_v62 }
 0x3c4   :  { %1801 = vmatmul.mubr.msk.bf16.vlgmr.msra.gmra.mrb[4].mxu0 %vm289_vm2, %v248_v63  ;;  %497 = vmatpush1.bf16.msra.mxu1 %v2269_v45 }
 0x3c5   :  { %1889 = vmatpush3.bf16.msra.mxu0 %v2217_v2  ;;  %1892 = vmatprep.mubr.msk.bf16.mxu0 %vm2159_vm0, %v2158_v0 }
 0x3c6   :  { %1890 = vmatprep.subr.bf16.mxu0 %v2158_v0  ;;  %498 = vmatprep.subr.bf16.mxu1 %v2271_v46  ;;  %v2330_v3 = vpop.permute.xlu0 %350 }
 0x3c7   :  { %528 = vmatprep.mubr.bf16.mxu1 %v2163_v56 }
 0x3c8   :  { %499 = vmatpush1.bf16.msra.mxu1 %v2276_v47 }
 0x3c9   :  { %1891 = vmatpush3.bf16.msra.mxu0 %v2221_v4  ;;  %500 = vmatprep.subr.bf16.mxu1 %v2279_v48 }
 0x3ca   :  { %679 = vmatprep.subr.bf16.mxu0 %v2267_v44 }
 0x3cc   :  { %501 = vmatpush1.bf16.msra.mxu1 %v2287_v52 }
 0x3cd   :  { %502 = vmatprep.subr.bf16.mxu1 %v2290_v53 }
 0x3d0   :  { %503 = vmatpush1.bf16.msra.mxu1 %v2296_v55 }
 0x3d1   :  { %1896 = vmatprep.subr.bf16.mxu1 %v2158_v0 }
 0x496   :  { %v434_v1 = vpop.f32.mrb[4].mxu1 }
 0x497   :  { %v326_v5 = vpop.f32.mrb[4].mxu0  ;;  %v1886_v6 = vpop.f32.mrb[5].mxu1  ;;  %v450_v13 = vadd.f32 %v434_v1, %v2243_v10  ;;  %v441_v16 = vrot.slane %v434_v1, 7 }
 0x498   :  { %v437_v7 = vpop.f32.mrb[6].mxu1  ;;  %336 = vrot.lane.b32.xlu1 %v326_v5, %s2162_s14  ;;  %v328_v8 = vpop.f32.mrb[5].mxu0  ;;  %v333_v20 = vadd.f32 %v326_v5, %v2342_v18 }
 0x499   :  { %v353_v9 = vadd.f32 %v2330_v3, %v328_v8  ;;  %v1887_v11 = vpop.f32.mrb[7].mxu1  ;;  %338 = vrot.lane.b32.xlu0 %v328_v8, %s2162_s14  ;;  %v330_v12 = vpop.f32.mrb[6].mxu0  ;;  %v452_v15 = vrot.slane %v450_v13, 7  ;;  %v443_v17 = vadd.f32 %v441_v16, %v2250_v21 }
 0x49a   :  { %v331_v14 = vpop.f32.mrb[7].mxu0 }
 0x49b   :  { %v1804_v23 = vmul.f32 -1.442695, %v443_v17 }
 0x49c   :  { %355 = vrot.lane.b32.xlu1 %v353_v9, %s2164_s18 }
 0x49d   :  { %1982 = vpow2.f32 %v1804_v23 }
 0x4a0   :  { %453 = vrot.lane.b32.xlu1 %v452_v15, %s2160_s12 }
 0x4a7   :  { %v1983_v27 = vpop.eup %1982 }
 0x4a8   :  { %v447_v30 = vadd.f32 1.0, %v1983_v27 }
 0x50a   :  { %v337_v19 = vpop.permute.xlu1 %336 }
 0x50b   :  { %v339_v22 = vpop.permute.xlu0 %338 }
 0x50c   :  { %v340_v24 = vsel %vm79_vm1, %v337_v19, %v339_v22 }
 0x50d   :  { %v342_v25 = vadd.f32 %v340_v24, %v333_v20 }
 0x50e   :  { %v356_v31 = vpop.permute.xlu1 %355 }
 0x50f   :  { %v1802_v26 = vmul.f32 -1.442695, %v342_v25 }
 0x511   :  { %1984 = vpow2.f32 %v1802_v26 }
 0x512   :  { %v454_v34 = vpop.permute.xlu1 %453 }
 0x51b   :  { %v1985_v28 = vpop.eup %1984 }
 0x51c   :  { %v346_v29 = vadd.f32 1.0, %v1985_v28 }
 0x51e   :  { %1986 = vrcp.f32 %v346_v29 }
 0x51f   :  { %1988 = vrcp.f32 %v447_v30 }
 0x528   :  { %v1987_v32 = vpop.eup %1986 }
 0x529   :  { %v358_v33 = vmul.f32 %v1987_v32, %v356_v31  ;;  %v1989_v37 = vpop.eup %1988 }
 0x52a   :  { %v456_v38 = vmul.f32 %v1989_v37, %v454_v34 }
 0x52b   :  { %360 = vrot.lane.b32.xlu0 %v358_v33, %s2160_s12 }
 0x52f   :  { %458 = vrot.lane.b32.xlu0 %v456_v38, %s2160_s12 }
 0x59d   :  { %v361_v39 = vpop.permute.xlu0 %360 }
 0x59e   :  { %v363_v41 = vadd.f32 %v361_v39, %v333_v20 }
 0x5a0   :  { %1990 = vtanh.f32 %v363_v41 }
 0x5a1   :  { %v459_v42 = vpop.permute.xlu0 %458 }
 0x5a2   :  { %v461_v43 = vadd.f32 %v459_v42, %v2250_v21 }
 0x5a4   :  { %1992 = vtanh.f32 %v461_v43 }
 0x5aa   :  { %v1991_v49 = vpop.eup %1990 }
 0x5ab   :  { %v372_v51 = vrot.slane %v1991_v49, %v2258_v36 }
 0x5ad   :  { %v379_v54 = vrot.slane %v372_v51, %v2258_v36 }
 0x5ae   :  { %v1993_v57 = vpop.eup %1992 }
 0x5af   :  { %380 = vrot.lane.b32.xlu1 %v379_v54, %s2160_s12  ;;  %v464_v59 = vrot.slane %v1993_v57, 1 }
 0x5b1   :  { %v466_v60 = vsub.f32 %v2303_v58, %v464_v59 }
 0x5b3   :  { %v468_v61 = vrot.slane %v466_v60, 7 }
 0x5b5   :  { %469 = vrot.lane.b32.xlu1 %v468_v61, %s2164_s18 }
 0x621   :  { %v381_v62 = vpop.permute.xlu1 %380 }
 0x622   :  { %v383_v63 = vsub.f32 %v2284_v50, %v381_v62 }
 0x624   :  { %v388_v1 = vrot.slane %v383_v63, %v227_v40 }
 0x626   :  { %389 = vrot.lane.b32.xlu0 %v388_v1, %s2162_s14 }
 0x627   :  { %v470_v5 = vpop.permute.xlu1 %469 }
 0x628   :  { %v472_v6 = vmul.f32 %v1989_v37, %v470_v5 }
 0x62a   :  { %474 = vrot.lane.b32.xlu1 %v472_v6, %s2162_s14 }
 0x698   :  { %v390_v36 = vpop.permute.xlu0 %389 }
 0x699   :  { %v392_v7 = vmul.f32 %v1987_v32, %v390_v36 }
 0x69b   :  { %394 = vrot.lane.b32.xlu0 %v392_v7, %s2162_s14 }
 0x69c   :  { %v475_v58 = vpop.permute.xlu1 %474 }
 0x69d   :  { %v2360_v8 = vadd.f32 %v1993_v57, %v475_v58 }
 0x69f   :  { %v478_v9 = vpack.c.bf16 %v2360_v8, %v2360_v8 }
 0x6a1   :  { %481 = vrot.lane.b32.xlu0 %v478_v9, %s2160_s12  ;;  %v577_v35 = vshrl.u32 %v478_v9, 16 }
 0x6a5   :  { %579 = vrot.lane.b32.xlu0 %v577_v35, %s2160_s12 }
 0x70d   :  { %v395_v40 = vpop.permute.xlu0 %394 }
 0x70e   :  { %v2366_v50 = vadd.f32 %v1991_v49, %v395_v40 }
 0x710   :  { %v479_v11 = vpack.c.bf16 %v2366_v50, %v2366_v50 }
 0x712   :  { %v484_v12 = vshll.u32 %v479_v11, 16 }
 0x713   :  { %v482_v13 = vpop.permute.xlu0 %481 }
 0x714   :  { %486 = vrot.lane.b32.xlu1 %v484_v12, %s2164_s18 }
 0x717   :  { %v580_v14 = vpop.permute.xlu0 %579 }
 0x718   :  { %1893 = vmatmul.mubr.msk.bf16.vlgmr.msra.gmra.mrb[8].mxu0 %vm79_vm1, %v580_v14 }
 0x719   :  { %680 = vmatpush1.bf16.msra.mxu0 %v2269_v45  ;;  %711 = vmatprep.mubr.bf16.mxu0 %v2163_v56 }
 0x71a   :  { %681 = vmatprep.subr.bf16.mxu0 %v2271_v46 }
 0x71d   :  { %682 = vmatpush1.bf16.msra.mxu0 %v2276_v47 }
 0x71e   :  { %683 = vmatprep.subr.bf16.mxu0 %v2279_v48 }
 0x721   :  { %684 = vmatpush1.bf16.msra.mxu0 %v2287_v52 }
 0x722   :  { %685 = vmatprep.subr.bf16.mxu0 %v2290_v53 }
 0x725   :  { %686 = vmatpush1.bf16.msra.mxu0 %v2296_v55 }
 0x726   :  { %1904 = vmatprep.subr.bf16.mxu0 %v2158_v0 }
 0x786   :  { %v487_v15 = vpop.permute.xlu1 %486 }
 0x787   :  { %v490_v16 = vsel %vm79_vm1, %v482_v13, %v487_v15 }
 0x788   :  { %v491_v17 = vshrl.u32 %v490_v16, 16 }
 0x78a   :  { %1805 = vmatmul.mubr.msk.bf16.vlgmr.msra.gmra.mrb[8].mxu1 %vm289_vm2, %v491_v17 }
 0x78b   :  { %1897 = vmatpush3.bf16.msra.mxu1 %v2217_v2  ;;  %1900 = vmatprep.mubr.msk.bf16.mxu1 %vm2159_vm0, %v2158_v0 }
 0x78c   :  { %1898 = vmatprep.subr.bf16.mxu1 %v2158_v0 }
 0x78f   :  { %1899 = vmatpush3.bf16.msra.mxu1 %v2221_v4 }
 0x790   :  { %863 = vmatprep.subr.bf16.mxu1 %v2267_v44 }
 0x7eb   :  { %v618_v19 = vpop.f32.mrb[8].mxu0 }
 0x7ec   :  { %v1894_v20 = vpop.f32.mrb[9].mxu0  ;;  %v634_v24 = vadd.f32 %v618_v19, %v2243_v10  ;;  %v625_v31 = vrot.slane %v618_v19, 6 }
 0x7ed   :  { %v621_v22 = vpop.f32.mrb[10].mxu0 }
 0x7ee   :  { %v1895_v23 = vpop.f32.mrb[11].mxu0  ;;  %v636_v28 = vrot.slane %v634_v24, 6  ;;  %v627_v32 = vadd.f32 %v625_v31, %v2250_v21 }
 0x7f0   :  { %v1808_v33 = vmul.f32 -1.442695, %v627_v32 }
 0x7f2   :  { %1994 = vpow2.f32 %v1808_v33 }
 0x7fc   :  { %v1995_v34 = vpop.eup %1994 }
 0x7fd   :  { %v631_v37 = vadd.f32 1.0, %v1995_v34 }
 0x7ff   :  { %1996 = vrcp.f32 %v631_v37 }
 0x809   :  { %v1997_v49 = vpop.eup %1996 }
 0x85d   :  { %v530_v25 = vpop.f32.mrb[8].mxu1 }
 0x85e   :  { %540 = vrot.lane.b32.xlu1 %v530_v25, %s2162_s14  ;;  %v532_v26 = vpop.f32.mrb[9].mxu1  ;;  %v537_v39 = vadd.f32 %v530_v25, %v2342_v18 }
 0x85f   :  { %542 = vrot.lane.b32.xlu0 %v532_v26, %s2162_s14  ;;  %v534_v27 = vpop.f32.mrb[10].mxu1  ;;  %v553_v30 = vadd.f32 %v532_v26, %v2330_v3 }
 0x860   :  { %v535_v29 = vpop.f32.mrb[11].mxu1 }
 0x862   :  { %637 = vrot.lane.b32.xlu1 %v636_v28, %s2160_s12 }
 0x863   :  { %555 = vrot.lane.b32.xlu0 %v553_v30, %s2164_s18 }
 0x8d0   :  { %v541_v38 = vpop.permute.xlu1 %540 }
 0x8d1   :  { %v543_v41 = vpop.permute.xlu0 %542 }
 0x8d2   :  { %v544_v42 = vsel %vm79_vm1, %v541_v38, %v543_v41 }
 0x8d3   :  { %v546_v43 = vadd.f32 %v544_v42, %v537_v39 }
 0x8d4   :  { %v638_v51 = vpop.permute.xlu1 %637 }
 0x8d5   :  { %v1806_v54 = vmul.f32 -1.442695, %v546_v43  ;;  %v640_v57 = vmul.f32 %v1997_v49, %v638_v51  ;;  %v556_v62 = vpop.permute.xlu0 %555 }
 0x8d7   :  { %1998 = vpow2.f32 %v1806_v54  ;;  %642 = vrot.lane.b32.xlu1 %v640_v57, %s2160_s12 }
 0x8e1   :  { %v1999_v59 = vpop.eup %1998 }
 0x8e2   :  { %v550_v60 = vadd.f32 1.0, %v1999_v59 }
 0x8e4   :  { %2000 = vrcp.f32 %v550_v60 }
 0x8ee   :  { %v2001_v61 = vpop.eup %2000 }
 0x8ef   :  { %v558_v63 = vmul.f32 %v2001_v61, %v556_v62 }
 0x8f1   :  { %560 = vrot.lane.b32.xlu0 %v558_v63, %s2160_s12 }
 0x949   :  { %v643_v1 = vpop.permute.xlu1 %642 }
 0x94a   :  { %v645_v5 = vadd.f32 %v643_v1, %v2250_v21 }
 0x94c   :  { %2002 = vtanh.f32 %v645_v5 }
 0x956   :  { %v2003_v6 = vpop.eup %2002 }
 0x957   :  { %v648_v36 = vrot.slane %v2003_v6, 1 }
 0x959   :  { %v650_v7 = vsub.f32 %v2360_v8, %v648_v36 }
 0x95b   :  { %v652_v58 = vrot.slane %v650_v7, 7 }
 0x95d   :  { %653 = vrot.lane.b32.xlu0 %v652_v58, %s2164_s18 }
 0x963   :  { %v561_v9 = vpop.permute.xlu0 %560 }
 0x964   :  { %v563_v35 = vadd.f32 %v561_v9, %v537_v39 }
 0x966   :  { %2004 = vtanh.f32 %v563_v35 }
 0x970   :  { %v2005_v40 = vpop.eup %2004 }
 0x971   :  { %v565_v11 = vsub.f32 %v2366_v50, %v2005_v40 }
 0x973   :  { %567 = vrot.lane.b32.xlu1 %v565_v11, %s2164_s18 }
 0x9cf   :  { %v654_v12 = vpop.permute.xlu0 %653 }
 0x9d0   :  { %v656_v13 = vmul.f32 %v1997_v49, %v654_v12 }
 0x9d2   :  { %658 = vrot.lane.b32.xlu0 %v656_v13, %s2162_s14 }
 0x9e5   :  { %v568_v14 = vpop.permute.xlu1 %567 }
 0x9e6   :  { %v570_v15 = vmul.f32 %v2001_v61, %v568_v14 }
 0x9e8   :  { %572 = vrot.lane.b32.xlu1 %v570_v15, %s2162_s14 }
 0xa44   :  { %v659_v8 = vpop.permute.xlu0 %658 }
 0xa45   :  { %v2407_v16 = vadd.f32 %v2003_v6, %v659_v8 }
 0xa47   :  { %v662_v17 = vpack.c.bf16 %v2407_v16, %v2407_v16 }
 0xa49   :  { %665 = vrot.lane.b32.xlu1 %v662_v17, %s2160_s12  ;;  %v759_v19 = vrot.slane %v662_v17, 1 }
 0xa4d   :  { %760 = vrot.lane.b32.xlu1 %v759_v19, %s2160_s12 }
 0xa5a   :  { %v573_v50 = vpop.permute.xlu1 %572 }
 0xa5b   :  { %v2413_v20 = vadd.f32 %v2005_v40, %v573_v50 }
 0xa5d   :  { %v663_v22 = vpack.c.bf16 %v2413_v20, %v2413_v20 }
 0xa5f   :  { %v668_v23 = vrot.slane %v663_v22, 7 }
 0xa61   :  { %669 = vrot.lane.b32.xlu0 %v668_v23, %s2164_s18 }
 0xabb   :  { %v666_v24 = vpop.permute.xlu1 %665 }
 0xabf   :  { %v761_v25 = vpop.permute.xlu1 %760 }
 0xac0   :  { %1901 = vmatmul.mubr.msk.bf16.vlgmr.msra.gmra.mrb[12].mxu1 %vm79_vm1, %v761_v25 }
 0xac1   :  { %864 = vmatpush1.bf16.msra.mxu1 %v2269_v45  ;;  %895 = vmatprep.mubr.bf16.mxu1 %v2163_v56 }
 0xac2   :  { %865 = vmatprep.subr.bf16.mxu1 %v2271_v46 }
 0xac5   :  { %866 = vmatpush1.bf16.msra.mxu1 %v2276_v47 }
 0xac6   :  { %867 = vmatprep.subr.bf16.mxu1 %v2279_v48 }
 0xac9   :  { %868 = vmatpush1.bf16.msra.mxu1 %v2287_v52 }
 0xaca   :  { %869 = vmatprep.subr.bf16.mxu1 %v2290_v53 }
 0xacd   :  { %870 = vmatpush1.bf16.msra.mxu1 %v2296_v55 }
 0xace   :  { %1912 = vmatprep.subr.bf16.mxu1 %v2158_v0 }
 0xad3   :  { %v670_v26 = vpop.permute.xlu0 %669 }
 0xad4   :  { %v673_v27 = vsel %vm79_vm1, %v666_v24, %v670_v26 }
 0xad5   :  { %v675_v28 = vrot.slane %v673_v27, 1 }
 0xad7   :  { %1809 = vmatmul.mubr.msk.bf16.vlgmr.msra.gmra.mrb[12].mxu0 %vm289_vm2, %v675_v28 }
 0xad8   :  { %1905 = vmatpush3.bf16.msra.mxu0 %v2217_v2  ;;  %1908 = vmatprep.mubr.msk.bf16.mxu0 %vm2159_vm0, %v2158_v0 }
 0xad9   :  { %1906 = vmatprep.subr.bf16.mxu0 %v2158_v0 }
 0xadc   :  { %1907 = vmatpush3.bf16.msra.mxu0 %v2221_v4 }
 0xadd   :  { %1047 = vmatprep.subr.bf16.mxu0 %v2267_v44 }
 0xb93   :  { %v799_v29 = vpop.f32.mrb[12].mxu1 }
 0xb94   :  { %v1902_v30 = vpop.f32.mrb[13].mxu1  ;;  %v815_v33 = vadd.f32 %v799_v29, %v2243_v10  ;;  %v806_v43 = vrot.slane %v799_v29, 5 }
 0xb95   :  { %v802_v31 = vpop.f32.mrb[14].mxu1 }
 0xb96   :  { %v1903_v32 = vpop.f32.mrb[15].mxu1  ;;  %v817_v42 = vrot.slane %v815_v33, 5  ;;  %v808_v49 = vadd.f32 %v806_v43, %v2250_v21 }
 0xb98   :  { %v1812_v51 = vmul.f32 -1.442695, %v808_v49 }
 0xb9a   :  { %2006 = vpow2.f32 %v1812_v51 }
 0xba4   :  { %v2007_v54 = vpop.eup %2006 }
 0xba5   :  { %v812_v57 = vadd.f32 1.0, %v2007_v54 }
 0xba7   :  { %2008 = vrcp.f32 %v812_v57 }
 0xbaa   :  { %v713_v34 = vpop.f32.mrb[12].mxu0 }
 0xbab   :  { %723 = vrot.lane.b32.xlu0 %v713_v34, %s2162_s14  ;;  %v715_v37 = vpop.f32.mrb[13].mxu0  ;;  %v720_v60 = vadd.f32 %v713_v34, %v2342_v18 }
 0xbac   :  { %v736_v38 = vadd.f32 %v715_v37, %v2330_v3  ;;  %725 = vrot.lane.b32.xlu1 %v715_v37, %s2162_s14  ;;  %v717_v39 = vpop.f32.mrb[14].mxu0 }
 0xbad   :  { %v718_v41 = vpop.f32.mrb[15].mxu0 }
 0xbaf   :  { %738 = vrot.lane.b32.xlu0 %v736_v38, %s2164_s18 }
 0xbb0   :  { %818 = vrot.lane.b32.xlu1 %v817_v42, %s2160_s12 }
 0xbb1   :  { %v2009_v1 = vpop.eup %2008 }
 0xc1d   :  { %v724_v59 = vpop.permute.xlu0 %723 }
 0xc1e   :  { %v726_v61 = vpop.permute.xlu1 %725 }
 0xc1f   :  { %v727_v62 = vsel %vm79_vm1, %v724_v59, %v726_v61 }
 0xc20   :  { %v729_v63 = vadd.f32 %v727_v62, %v720_v60 }
 0xc21   :  { %v739_v35 = vpop.permute.xlu0 %738 }
 0xc22   :  { %v1810_v5 = vmul.f32 -1.442695, %v729_v63  ;;  %v819_v6 = vpop.permute.xlu1 %818 }
 0xc23   :  { %v821_v36 = vmul.f32 %v2009_v1, %v819_v6 }
 0xc24   :  { %2010 = vpow2.f32 %v1810_v5 }
 0xc25   :  { %823 = vrot.lane.b32.xlu1 %v821_v36, %s2160_s12 }
 0xc2e   :  { %v2011_v7 = vpop.eup %2010 }
 0xc2f   :  { %v733_v58 = vadd.f32 1.0, %v2011_v7 }
 0xc31   :  { %2012 = vrcp.f32 %v733_v58 }
 0xc3b   :  { %v2013_v9 = vpop.eup %2012 }
 0xc3c   :  { %v741_v40 = vmul.f32 %v2013_v9, %v739_v35 }
 0xc3e   :  { %743 = vrot.lane.b32.xlu0 %v741_v40, %s2160_s12 }
 0xc97   :  { %v824_v11 = vpop.permute.xlu1 %823 }
 0xc98   :  { %v826_v12 = vadd.f32 %v824_v11, %v2250_v21 }
 0xc9a   :  { %2014 = vtanh.f32 %v826_v12 }
 0xca4   :  { %v2015_v13 = vpop.eup %2014 }
 0xca5   :  { %v829_v14 = vrot.slane %v2015_v13, 1 }
 0xca7   :  { %v831_v15 = vsub.f32 %v2407_v16, %v829_v14 }
 0xca9   :  { %v833_v8 = vrot.slane %v831_v15, 7 }
 0xcab   :  { %834 = vrot.lane.b32.xlu1 %v833_v8, %s2164_s18 }
 0xcb0   :  { %v744_v17 = vpop.permute.xlu0 %743 }
 0xcb1   :  { %v746_v19 = vadd.f32 %v744_v17, %v720_v60 }
 0xcb3   :  { %2016 = vtanh.f32 %v746_v19 }
 0xcbd   :  { %v2017_v50 = vpop.eup %2016 }
 0xcbe   :  { %v748_v22 = vsub.f32 %v2413_v20, %v2017_v50 }
 0xcc0   :  { %750 = vrot.lane.b32.xlu0 %v748_v22, %s2164_s18 }
 0xd1d   :  { %v835_v23 = vpop.permute.xlu1 %834 }
 0xd1e   :  { %v837_v24 = vmul.f32 %v2009_v1, %v835_v23 }
 0xd20   :  { %839 = vrot.lane.b32.xlu1 %v837_v24, %s2162_s14 }
 0xd32   :  { %v751_v25 = vpop.permute.xlu0 %750 }
 0xd33   :  { %v753_v26 = vmul.f32 %v2013_v9, %v751_v25 }
 0xd35   :  { %755 = vrot.lane.b32.xlu0 %v753_v26, %s2162_s14 }
 0xd92   :  { %v840_v16 = vpop.permute.xlu1 %839 }
 0xd93   :  { %v2454_v27 = vadd.f32 %v2015_v13, %v840_v16 }
 0xd95   :  { %v843_v28 = vpack.c.bf16 %v2454_v27, %v2454_v27 }
 0xd97   :  { %846 = vrot.lane.b32.xlu0 %v843_v28, %s2160_s12  ;;  %v944_v29 = vshrl.u32 %v843_v28, 16 }
 0xd99   :  { %v946_v20 = vrot.slane %v944_v29, 1 }
 0xd9b   :  { %947 = vrot.lane.b32.xlu0 %v946_v20, %s2160_s12 }
 0xda7   :  { %v756_v30 = vpop.permute.xlu0 %755 }
 0xda8   :  { %v2460_v31 = vadd.f32 %v2017_v50, %v756_v30 }
 0xdaa   :  { %v844_v32 = vpack.c.bf16 %v2460_v31, %v2460_v31 }
 0xdac   :  { %v849_v33 = vshll.u32 %v844_v32, 16 }
 0xdae   :  { %v851_v34 = vrot.slane %v849_v33, 7 }
 0xdb0   :  { %852 = vrot.lane.b32.xlu1 %v851_v34, %s2164_s18 }
 0xe09   :  { %v847_v37 = vpop.permute.xlu0 %846 }
 0xe0d   :  { %v948_v38 = vpop.permute.xlu0 %947 }
 0xe0e   :  { %1909 = vmatmul.mubr.msk.bf16.vlgmr.msra.gmra.mrb[16].mxu0 %vm79_vm1, %v948_v38 }
 0xe0f   :  { %1048 = vmatpush1.bf16.msra.mxu0 %v2269_v45  ;;  %1079 = vmatprep.mubr.bf16.mxu0 %v2163_v56 }
 0xe10   :  { %1049 = vmatprep.subr.bf16.mxu0 %v2271_v46 }
 0xe13   :  { %1050 = vmatpush1.bf16.msra.mxu0 %v2276_v47 }
 0xe14   :  { %1051 = vmatprep.subr.bf16.mxu0 %v2279_v48 }
 0xe17   :  { %1052 = vmatpush1.bf16.msra.mxu0 %v2287_v52 }
 0xe18   :  { %1053 = vmatprep.subr.bf16.mxu0 %v2290_v53 }
 0xe1b   :  { %1054 = vmatpush1.bf16.msra.mxu0 %v2296_v55 }
 0xe1c   :  { %1920 = vmatprep.subr.bf16.mxu0 %v2158_v0 }
 0xe22   :  { %v853_v39 = vpop.permute.xlu1 %852 }
 0xe23   :  { %v856_v41 = vsel %vm79_vm1, %v847_v37, %v853_v39 }
 0xe24   :  { %v857_v42 = vshrl.u32 %v856_v41, 16 }
 0xe26   :  { %v859_v43 = vrot.slane %v857_v42, 1 }
 0xe28   :  { %1813 = vmatmul.mubr.msk.bf16.vlgmr.msra.gmra.mrb[16].mxu1 %vm289_vm2, %v859_v43 }
 0xe29   :  { %1913 = vmatpush3.bf16.msra.mxu1 %v2217_v2  ;;  %1916 = vmatprep.mubr.msk.bf16.mxu1 %vm2159_vm0, %v2158_v0 }
 0xe2a   :  { %1914 = vmatprep.subr.bf16.mxu1 %v2158_v0 }
 0xe2d   :  { %1915 = vmatpush3.bf16.msra.mxu1 %v2221_v4 }
 0xe2e   :  { %1231 = vmatprep.subr.bf16.mxu1 %v2267_v44 }
 0xee1   :  { %v986_v49 = vpop.f32.mrb[16].mxu0 }
 0xee2   :  { %v1910_v51 = vpop.f32.mrb[17].mxu0  ;;  %v1002_v59 = vadd.f32 %v986_v49, %v2243_v10  ;;  %v993_v6 = vrot.slane %v986_v49, 4 }
 0xee3   :  { %v989_v54 = vpop.f32.mrb[18].mxu0 }
 0xee4   :  { %v1911_v57 = vpop.f32.mrb[19].mxu0  ;;  %v1004_v63 = vrot.slane %v1002_v59, 4  ;;  %v995_v36 = vadd.f32 %v993_v6, %v2250_v21 }
 0xee6   :  { %v1816_v7 = vmul.f32 -1.442695, %v995_v36 }
 0xee8   :  { %2018 = vpow2.f32 %v1816_v7 }
 0xef2   :  { %v2019_v58 = vpop.eup %2018 }
 0xef3   :  { %v999_v9 = vadd.f32 1.0, %v2019_v58 }
 0xef5   :  { %2020 = vrcp.f32 %v999_v9 }
 0xefb   :  { %v897_v60 = vpop.f32.mrb[16].mxu1 }
 0xefc   :  { %907 = vrot.lane.b32.xlu1 %v897_v60, %s2162_s14  ;;  %v899_v61 = vpop.f32.mrb[17].mxu1  ;;  %v904_v40 = vadd.f32 %v897_v60, %v2342_v18 }
 0xefd   :  { %909 = vrot.lane.b32.xlu0 %v899_v61, %s2162_s14  ;;  %v901_v62 = vpop.f32.mrb[18].mxu1  ;;  %v920_v5 = vadd.f32 %v899_v61, %v2330_v3 }
 0xefe   :  { %v902_v1 = vpop.f32.mrb[19].mxu1 }
 0xeff   :  { %v2021_v14 = vpop.eup %2020 }
 0xf00   :  { %1005 = vrot.lane.b32.xlu1 %v1004_v63, %s2160_s12 }
 0xf01   :  { %922 = vrot.lane.b32.xlu0 %v920_v5, %s2164_s18 }
 0xf6e   :  { %v908_v35 = vpop.permute.xlu1 %907 }
 0xf6f   :  { %v910_v11 = vpop.permute.xlu0 %909 }
 0xf70   :  { %v911_v12 = vsel %vm79_vm1, %v908_v35, %v910_v11 }
 0xf71   :  { %v913_v13 = vadd.f32 %v911_v12, %v904_v40 }
 0xf72   :  { %v1006_v15 = vpop.permute.xlu1 %1005 }
 0xf73   :  { %v1814_v8 = vmul.f32 -1.442695, %v913_v13  ;;  %v1008_v17 = vmul.f32 %v2021_v14, %v1006_v15  ;;  %v923_v23 = vpop.permute.xlu0 %922 }
 0xf75   :  { %2022 = vpow2.f32 %v1814_v8  ;;  %1010 = vrot.lane.b32.xlu1 %v1008_v17, %s2160_s12 }
 0xf7f   :  { %v2023_v19 = vpop.eup %2022 }
 0xf80   :  { %v917_v50 = vadd.f32 1.0, %v2023_v19 }
 0xf82   :  { %2024 = vrcp.f32 %v917_v50 }
 0xf8c   :  { %v2025_v22 = vpop.eup %2024 }
 0xf8d   :  { %v925_v24 = vmul.f32 %v2025_v22, %v923_v23 }
 0xf8f   :  { %927 = vrot.lane.b32.xlu0 %v925_v24, %s2160_s12 }
 0xfe7   :  { %v1011_v25 = vpop.permute.xlu1 %1010 }
 0xfe8   :  { %v1013_v26 = vadd.f32 %v1011_v25, %v2250_v21 }
 0xfea   :  { %2026 = vtanh.f32 %v1013_v26 }
 0xff4   :  { %v2027_v16 = vpop.eup %2026 }
 0xff5   :  { %v1016_v28 = vrot.slane %v2027_v16, 1 }
 0xff7   :  { %v1018_v29 = vsub.f32 %v2454_v27, %v1016_v28 }
 0xff9   :  { %v1020_v20 = vrot.slane %v1018_v29, 7 }
 0xffb   :  { %1021 = vrot.lane.b32.xlu0 %v1020_v20, %s2164_s18 }
0x1001   :  { %v928_v30 = vpop.permute.xlu0 %927 }
0x1002   :  { %v930_v32 = vadd.f32 %v928_v30, %v904_v40 }
0x1004   :  { %2028 = vtanh.f32 %v930_v32 }
0x100e   :  { %v2029_v33 = vpop.eup %2028 }
0x100f   :  { %v932_v34 = vsub.f32 %v2460_v31, %v2029_v33 }
0x1011   :  { %934 = vrot.lane.b32.xlu1 %v932_v34, %s2164_s18 }
0x106d   :  { %v1022_v37 = vpop.permute.xlu0 %1021 }
0x106e   :  { %v1024_v38 = vmul.f32 %v2021_v14, %v1022_v37 }
0x1070   :  { %1026 = vrot.lane.b32.xlu0 %v1024_v38, %s2162_s14 }
0x1083   :  { %v935_v39 = vpop.permute.xlu1 %934 }
0x1084   :  { %v937_v41 = vmul.f32 %v2025_v22, %v935_v39 }
0x1086   :  { %939 = vrot.lane.b32.xlu1 %v937_v41, %s2162_s14 }
0x10e2   :  { %v1027_v27 = vpop.permute.xlu0 %1026 }
0x10e3   :  { %v2501_v42 = vadd.f32 %v2027_v16, %v1027_v27 }
0x10e5   :  { %v1030_v43 = vpack.c.bf16 %v2501_v42, %v2501_v42 }
0x10e7   :  { %1033 = vrot.lane.b32.xlu1 %v1030_v43, %s2160_s12  ;;  %v1127_v49 = vrot.slane %v1030_v43, 2 }
0x10eb   :  { %1128 = vrot.lane.b32.xlu1 %v1127_v49, %s2160_s12 }
0x10f8   :  { %v940_v31 = vpop.permute.xlu1 %939 }
0x10f9   :  { %v2507_v51 = vadd.f32 %v2029_v33, %v940_v31 }
0x10fb   :  { %v1031_v54 = vpack.c.bf16 %v2507_v51, %v2507_v51 }
0x10fd   :  { %v1036_v57 = vrot.slane %v1031_v54, 6 }
0x10ff   :  { %1037 = vrot.lane.b32.xlu0 %v1036_v57, %s2164_s18 }
0x1159   :  { %v1034_v59 = vpop.permute.xlu1 %1033 }
0x115d   :  { %v1129_v60 = vpop.permute.xlu1 %1128 }
0x115e   :  { %1917 = vmatmul.mubr.msk.bf16.vlgmr.msra.gmra.mrb[20].mxu1 %vm79_vm1, %v1129_v60 }
0x115f   :  { %1232 = vmatpush1.bf16.msra.mxu1 %v2269_v45  ;;  %1263 = vmatprep.mubr.bf16.mxu1 %v2163_v56 }
0x1160   :  { %1233 = vmatprep.subr.bf16.mxu1 %v2271_v46 }
0x1163   :  { %1234 = vmatpush1.bf16.msra.mxu1 %v2276_v47 }
0x1164   :  { %1235 = vmatprep.subr.bf16.mxu1 %v2279_v48 }
0x1167   :  { %1236 = vmatpush1.bf16.msra.mxu1 %v2287_v52 }
0x1168   :  { %1237 = vmatprep.subr.bf16.mxu1 %v2290_v53 }
0x116b   :  { %1238 = vmatpush1.bf16.msra.mxu1 %v2296_v55 }
0x116c   :  { %1928 = vmatprep.subr.bf16.mxu1 %v2158_v0 }
0x1171   :  { %v1038_v61 = vpop.permute.xlu0 %1037 }
0x1172   :  { %v1041_v62 = vsel %vm79_vm1, %v1034_v59, %v1038_v61 }
0x1173   :  { %v1043_v63 = vrot.slane %v1041_v62, 2 }
0x1175   :  { %1817 = vmatmul.mubr.msk.bf16.vlgmr.msra.gmra.mrb[20].mxu0 %vm289_vm2, %v1043_v63 }
0x1176   :  { %1921 = vmatpush3.bf16.msra.mxu0 %v2217_v2  ;;  %1924 = vmatprep.mubr.msk.bf16.mxu0 %vm2159_vm0, %v2158_v0 }
0x1177   :  { %1922 = vmatprep.subr.bf16.mxu0 %v2158_v0 }
0x117a   :  { %1923 = vmatpush3.bf16.msra.mxu0 %v2221_v4 }
0x117b   :  { %1415 = vmatprep.subr.bf16.mxu0 %v2267_v44 }
0x1231   :  { %v1167_v1 = vpop.f32.mrb[20].mxu1 }
0x1232   :  { %v1918_v5 = vpop.f32.mrb[21].mxu1  ;;  %v1183_v7 = vadd.f32 %v1167_v1, %v2243_v10  ;;  %v1174_v4 = vrot.slane %v1167_v1, 3 }
0x1233   :  { %v1170_v6 = vpop.f32.mrb[22].mxu1 }
0x1234   :  { %v1919_v36 = vpop.f32.mrb[23].mxu1  ;;  %v1185_v11 = vrot.slane %v1183_v7, 3  ;;  %v1176_v44 = vadd.f32 %v1174_v4, %v2250_v21 }
0x1236   :  { %v1820_v12 = vmul.f32 -1.442695, %v1176_v44 }
0x1238   :  { %2030 = vpow2.f32 %v1820_v12 }
0x1242   :  { %v2031_v13 = vpop.eup %2030 }
0x1243   :  { %v1180_v14 = vadd.f32 1.0, %v2031_v13 }
0x1245   :  { %2032 = vrcp.f32 %v1180_v14 }
0x1248   :  { %v1081_v58 = vpop.f32.mrb[20].mxu0 }
0x1249   :  { %1091 = vrot.lane.b32.xlu0 %v1081_v58, %s2162_s14  ;;  %v1083_v9 = vpop.f32.mrb[21].mxu0  ;;  %v1088_v8 = vadd.f32 %v1081_v58, %v2342_v18 }
0x124a   :  { %v1104_v2 = vadd.f32 %v1083_v9, %v2330_v3  ;;  %1093 = vrot.lane.b32.xlu1 %v1083_v9, %s2162_s14  ;;  %v1085_v35 = vpop.f32.mrb[22].mxu0 }
0x124b   :  { %v1086_v40 = vpop.f32.mrb[23].mxu0 }
0x124d   :  { %1106 = vrot.lane.b32.xlu0 %v1104_v2, %s2164_s18 }
0x124e   :  { %1186 = vrot.lane.b32.xlu1 %v1185_v11, %s2160_s12 }
0x124f   :  { %v2033_v22 = vpop.eup %2032 }
0x12bb   :  { %v1092_v15 = vpop.permute.xlu0 %1091 }
0x12bc   :  { %v1094_v17 = vpop.permute.xlu1 %1093 }
0x12bd   :  { %v1095_v19 = vsel %vm79_vm1, %v1092_v15, %v1094_v17 }
0x12be   :  { %v1097_v50 = vadd.f32 %v1095_v19, %v1088_v8 }
0x12bf   :  { %v1107_v29 = vpop.permute.xlu0 %1106 }
0x12c0   :  { %v1818_v23 = vmul.f32 -1.442695, %v1097_v50  ;;  %v1187_v24 = vpop.permute.xlu1 %1186 }
0x12c1   :  { %v1189_v25 = vmul.f32 %v2033_v22, %v1187_v24 }
0x12c2   :  { %2034 = vpow2.f32 %v1818_v23 }
0x12c3   :  { %1191 = vrot.lane.b32.xlu1 %v1189_v25, %s2160_s12 }
0x12cc   :  { %v2035_v26 = vpop.eup %2034 }
0x12cd   :  { %v1101_v16 = vadd.f32 1.0, %v2035_v26 }
0x12cf   :  { %2036 = vrcp.f32 %v1101_v16 }
0x12d9   :  { %v2037_v28 = vpop.eup %2036 }
0x12da   :  { %v1109_v20 = vmul.f32 %v2037_v28, %v1107_v29 }
0x12dc   :  { %1111 = vrot.lane.b32.xlu0 %v1109_v20, %s2160_s12 }
0x1335   :  { %v1192_v30 = vpop.permute.xlu1 %1191 }
0x1336   :  { %v1194_v32 = vadd.f32 %v1192_v30, %v2250_v21 }
0x1338   :  { %2038 = vtanh.f32 %v1194_v32 }
0x1342   :  { %v2039_v33 = vpop.eup %2038 }
0x1343   :  { %v1197_v34 = vrot.slane %v2039_v33, 1 }
0x1345   :  { %v1199_v37 = vsub.f32 %v2501_v42, %v1197_v34 }
0x1347   :  { %v1201_v38 = vrot.slane %v1199_v37, 7 }
0x1349   :  { %1202 = vrot.lane.b32.xlu1 %v1201_v38, %s2164_s18 }
0x134e   :  { %v1112_v39 = vpop.permute.xlu0 %1111 }
0x134f   :  { %v1114_v41 = vadd.f32 %v1112_v39, %v1088_v8 }
0x1351   :  { %2040 = vtanh.f32 %v1114_v41 }
0x135b   :  { %v2041_v27 = vpop.eup %2040 }
0x135c   :  { %v1116_v43 = vsub.f32 %v2507_v51, %v2041_v27 }
0x135e   :  { %1118 = vrot.lane.b32.xlu0 %v1116_v43, %s2164_s18 }
0x13bb   :  { %v1203_v49 = vpop.permute.xlu1 %1202 }
0x13bc   :  { %v1205_v31 = vmul.f32 %v2033_v22, %v1203_v49 }
0x13be   :  { %1207 = vrot.lane.b32.xlu1 %v1205_v31, %s2162_s14 }
0x13d0   :  { %v1119_v54 = vpop.permute.xlu0 %1118 }
0x13d1   :  { %v1121_v57 = vmul.f32 %v2037_v28, %v1119_v54 }
0x13d3   :  { %1123 = vrot.lane.b32.xlu0 %v1121_v57, %s2162_s14 }
0x1430   :  { %v1208_v42 = vpop.permute.xlu1 %1207 }
0x1431   :  { %v2548_v59 = vadd.f32 %v2039_v33, %v1208_v42 }
0x1433   :  { %v1211_v60 = vpack.c.bf16 %v2548_v59, %v2548_v59 }
0x1435   :  { %1214 = vrot.lane.b32.xlu0 %v1211_v60, %s2160_s12  ;;  %v1312_v61 = vshrl.u32 %v1211_v60, 16 }
0x1437   :  { %v1314_v51 = vrot.slane %v1312_v61, 2 }
0x1439   :  { %1315 = vrot.lane.b32.xlu0 %v1314_v51, %s2160_s12 }
0x1445   :  { %v1124_v62 = vpop.permute.xlu0 %1123 }
0x1446   :  { %v2554_v63 = vadd.f32 %v2041_v27, %v1124_v62 }
0x1448   :  { %v1212_v1 = vpack.c.bf16 %v2554_v63, %v2554_v63 }
0x144a   :  { %v1217_v5 = vshll.u32 %v1212_v1, 16 }
0x144c   :  { %v1219_v6 = vrot.slane %v1217_v5, 6 }
0x144e   :  { %1220 = vrot.lane.b32.xlu1 %v1219_v6, %s2164_s18 }
0x14a7   :  { %v1215_v36 = vpop.permute.xlu0 %1214 }
0x14ab   :  { %v1316_v7 = vpop.permute.xlu0 %1315 }
0x14ac   :  { %1925 = vmatmul.mubr.msk.bf16.vlgmr.msra.gmra.mrb[24].mxu0 %vm79_vm1, %v1316_v7 }
0x14ad   :  { %1416 = vmatpush1.bf16.msra.mxu0 %v2269_v45  ;;  %1447 = vmatprep.mubr.bf16.mxu0 %v2163_v56 }
0x14ae   :  { %1417 = vmatprep.subr.bf16.mxu0 %v2271_v46  ;;  %v2072_v46 = vld [vmem:[#allocation2 + $0x4] ss:$8 sps:$4 sm:$0xff]  }
0x14b1   :  { %1418 = vmatpush1.bf16.msra.mxu0 %v2276_v47  ;;  %v2073_v47 = vld [vmem:[#allocation2 + $0x14] ss:$8 sps:$4 sm:$0xff]  }
0x14b2   :  { %1419 = vmatprep.subr.bf16.mxu0 %v2279_v48  ;;  %v2074_v48 = vld [vmem:[#allocation2 + $0x24] ss:$8 sps:$4 sm:$0xff]  }
0x14b5   :  { %1420 = vmatpush1.bf16.msra.mxu0 %v2287_v52 }
0x14b6   :  { %1421 = vmatprep.subr.bf16.mxu0 %v2290_v53 }
0x14b9   :  { %1422 = vmatpush1.bf16.msra.mxu0 %v2296_v55 }
0x14ba   :  { %1936 = vmatprep.subr.bf16.mxu0 %v2158_v0 }
0x14c0   :  { %v1221_v58 = vpop.permute.xlu1 %1220 }
0x14c1   :  { %v1224_v9 = vsel %vm79_vm1, %v1215_v36, %v1221_v58 }
0x14c2   :  { %v1225_v45 = vshrl.u32 %v1224_v9, 16 }
0x14c4   :  { %v1227_v2 = vrot.slane %v1225_v45, 2  ;;  %v2075_v45 = vld [vmem:[#allocation2 + $0x20] ss:$8 sps:$4 sm:$0xff]  }
0x14c6   :  { %1821 = vmatmul.mubr.msk.bf16.vlgmr.msra.gmra.mrb[24].mxu1 %vm289_vm2, %v1227_v2  ;;  %v2076_v2 = vld [vmem:[#allocation2 + $0x34] ss:$8 sps:$4 sm:$0xff]  }
0x14c7   :  { %1929 = vmatpush3.bf16.msra.mxu1 %v2072_v46  ;;  %1932 = vmatprep.mubr.msk.bf16.mxu1 %vm2159_vm0, %v2158_v0  ;;  %v2077_v46 = vld [vmem:[#allocation2 + $0x30] ss:$8 sps:$4 sm:$0xff]  }
0x14c8   :  { %1930 = vmatprep.subr.bf16.mxu1 %v2158_v0 }
0x14cb   :  { %1931 = vmatpush3.bf16.msra.mxu1 %v2073_v47  ;;  %v2078_v47 = vld [vmem:[#allocation2 + $0x44] ss:$8 sps:$4 sm:$0xff]  }
0x14cc   :  { %1599 = vmatprep.subr.bf16.mxu1 %v2074_v48  ;;  %v2079_v48 = vld [vmem:[#allocation2 + $0x40] ss:$8 sps:$4 sm:$0xff]  }
0x157f   :  { %v1354_v52 = vpop.f32.mrb[24].mxu0 }
0x1580   :  { %v1926_v53 = vpop.f32.mrb[25].mxu0  ;;  %v1370_v40 = vadd.f32 %v1354_v52, %v2243_v10  ;;  %v1361_v15 = vrot.slane %v1354_v52, 2  ;;  %v2080_v52 = vld [vmem:[#allocation2 + $0x54] ss:$8 sps:$4 sm:$0xff]  }
0x1581   :  { %v1357_v55 = vpop.f32.mrb[26].mxu0  ;;  %v2081_v53 = vld [vmem:[#allocation2 + $0x50] ss:$8 sps:$4 sm:$0xff]  }
0x1582   :  { %v1927_v35 = vpop.f32.mrb[27].mxu0  ;;  %v1372_v12 = vrot.slane %v1370_v40, 2  ;;  %v1363_v8 = vadd.f32 %v1361_v15, %v2250_v21 }
0x1584   :  { %v1824_v17 = vmul.f32 -1.442695, %v1363_v8 }
0x1586   :  { %2042 = vpow2.f32 %v1824_v17 }
0x1590   :  { %v2043_v19 = vpop.eup %2042 }
0x1591   :  { %v1367_v50 = vadd.f32 1.0, %v2043_v19 }
0x1593   :  { %2044 = vrcp.f32 %v1367_v50 }
0x1599   :  { %v1265_v11 = vpop.f32.mrb[24].mxu1 }
0x159a   :  { %1275 = vrot.lane.b32.xlu1 %v1265_v11, %s2162_s14  ;;  %v1267_v4 = vpop.f32.mrb[25].mxu1  ;;  %v1272_v23 = vadd.f32 %v1265_v11, %v2342_v18 }
0x159b   :  { %1277 = vrot.lane.b32.xlu0 %v1267_v4, %s2162_s14  ;;  %v1269_v44 = vpop.f32.mrb[26].mxu1  ;;  %v1288_v14 = vadd.f32 %v1267_v4, %v2330_v3 }
0x159c   :  { %v1270_v13 = vpop.f32.mrb[27].mxu1 }
0x159d   :  { %v2045_v16 = vpop.eup %2044 }
0x159e   :  { %1373 = vrot.lane.b32.xlu1 %v1372_v12, %s2160_s12 }
0x159f   :  { %1290 = vrot.lane.b32.xlu0 %v1288_v14, %s2164_s18 }
0x160c   :  { %v1276_v22 = vpop.permute.xlu1 %1275 }
0x160d   :  { %v1278_v24 = vpop.permute.xlu0 %1277 }
0x160e   :  { %v1279_v25 = vsel %vm79_vm1, %v1276_v22, %v1278_v24 }
0x160f   :  { %v1281_v26 = vadd.f32 %v1279_v25, %v1272_v23 }
0x1610   :  { %v1374_v28 = vpop.permute.xlu1 %1373 }
0x1611   :  { %v1822_v29 = vmul.f32 -1.442695, %v1281_v26  ;;  %v1376_v20 = vmul.f32 %v2045_v16, %v1374_v28  ;;  %v1291_v34 = vpop.permute.xlu0 %1290  ;;  %v2619_v26 = vld [vmem:[%s2680_s3 + $0x1] sm:$0x1] }
0x1613   :  { %2046 = vpow2.f32 %v1822_v29  ;;  %1378 = vrot.lane.b32.xlu1 %v1376_v20, %s2160_s12 }
0x161d   :  { %v2047_v30 = vpop.eup %2046 }
0x161e   :  { %v1285_v32 = vadd.f32 1.0, %v2047_v30 }
0x1620   :  { %2048 = vrcp.f32 %v1285_v32 }
0x162a   :  { %v2049_v33 = vpop.eup %2048 }
0x162b   :  { %v1293_v37 = vmul.f32 %v2049_v33, %v1291_v34 }
0x162d   :  { %1295 = vrot.lane.b32.xlu0 %v1293_v37, %s2160_s12 }
0x1685   :  { %v1379_v18 = vpop.permute.xlu1 %1378 }
0x1686   :  { %v1381_v38 = vadd.f32 %v1379_v18, %v2250_v21 }
0x1688   :  { %2050 = vtanh.f32 %v1381_v38 }
0x1692   :  { %v2051_v39 = vpop.eup %2050 }
0x1693   :  { %v1384_v41 = vrot.slane %v2051_v39, 1 }
0x1695   :  { %v1386_v27 = vsub.f32 %v2548_v59, %v1384_v41 }
0x1697   :  { %v1388_v43 = vrot.slane %v1386_v27, 7 }
0x1699   :  { %1389 = vrot.lane.b32.xlu0 %v1388_v43, %s2164_s18 }
0x169f   :  { %v1296_v49 = vpop.permute.xlu0 %1295 }
0x16a0   :  { %v1298_v31 = vadd.f32 %v1296_v49, %v1272_v23 }
0x16a2   :  { %2052 = vtanh.f32 %v1298_v31 }
0x16ac   :  { %v2053_v54 = vpop.eup %2052 }
0x16ad   :  { %v1300_v57 = vsub.f32 %v2554_v63, %v2053_v54 }
0x16af   :  { %1302 = vrot.lane.b32.xlu1 %v1300_v57, %s2164_s18 }
0x170b   :  { %v1390_v42 = vpop.permute.xlu0 %1389 }
0x170c   :  { %v1392_v60 = vmul.f32 %v2045_v16, %v1390_v42 }
0x170e   :  { %1394 = vrot.lane.b32.xlu0 %v1392_v60, %s2162_s14 }
0x1721   :  { %v1303_v61 = vpop.permute.xlu1 %1302 }
0x1722   :  { %v1305_v51 = vmul.f32 %v2049_v33, %v1303_v61 }
0x1724   :  { %1307 = vrot.lane.b32.xlu1 %v1305_v51, %s2162_s14 }
0x1780   :  { %v1395_v59 = vpop.permute.xlu0 %1394 }
0x1781   :  { %v2592_v62 = vadd.f32 %v2051_v39, %v1395_v59 }
0x1783   :  { %v1398_v1 = vpack.c.bf16 %v2592_v62, %v2592_v62 }
0x1785   :  { %1401 = vrot.lane.b32.xlu1 %v1398_v1, %s2160_s12  ;;  %v1495_v5 = vrot.slane %v1398_v1, 3 }
0x1789   :  { %1496 = vrot.lane.b32.xlu1 %v1495_v5, %s2160_s12 }
0x1796   :  { %v1308_v63 = vpop.permute.xlu1 %1307 }
0x1797   :  { %v2598_v6 = vadd.f32 %v2053_v54, %v1308_v63 }
0x1799   :  { %v1399_v36 = vpack.c.bf16 %v2598_v6, %v2598_v6 }
0x179b   :  { %v1404_v7 = vrot.slane %v1399_v36, 5 }
0x179d   :  { %1405 = vrot.lane.b32.xlu0 %v1404_v7, %s2164_s18 }
0x17f7   :  { %v1402_v58 = vpop.permute.xlu1 %1401 }
0x17fb   :  { %v1497_v9 = vpop.permute.xlu1 %1496 }
0x17fc   :  { %1933 = vmatmul.mubr.msk.bf16.vlgmr.msra.gmra.mrb[28].mxu1 %vm79_vm1, %v1497_v9 }
0x17fd   :  { %1600 = vmatpush1.bf16.msra.mxu1 %v2075_v45  ;;  %1631 = vmatprep.mubr.bf16.mxu1 %v2163_v56 }
0x17fe   :  { %1601 = vmatprep.subr.bf16.mxu1 %v2076_v2 }
0x1801   :  { %1602 = vmatpush1.bf16.msra.mxu1 %v2077_v46 }
0x1802   :  { %1603 = vmatprep.subr.bf16.mxu1 %v2078_v47 }
0x1805   :  { %1604 = vmatpush1.bf16.msra.mxu1 %v2079_v48 }
0x1806   :  { %1605 = vmatprep.subr.bf16.mxu1 %v2080_v52 }
0x1809   :  { %1606 = vmatpush1.bf16.msra.mxu1 %v2081_v53 }
0x180f   :  { %v1406_v55 = vpop.permute.xlu0 %1405 }
0x1810   :  { %v1409_v35 = vsel %vm79_vm1, %v1402_v58, %v1406_v55 }
0x1811   :  { %v1411_v40 = vrot.slane %v1409_v35, 3 }
0x1813   :  { %1825 = vmatmul.mubr.msk.bf16.vlgmr.msra.gmra.mrb[28].mxu0 %vm289_vm2, %v1411_v40 }
0x1814   :  { %1940 = vmatprep.mubr.msk.bf16.mxu0 %vm2159_vm0, %v2158_v0 }
0x18cf   :  { %v1535_v56 = vpop.f32.mrb[28].mxu1 }
0x18d0   :  { %v1934_v11 = vpop.f32.mrb[29].mxu1  ;;  %v1551_v12 = vadd.f32 %v1535_v56, %v2243_v10  ;;  %v1542_v50 = vrot.slane %v1535_v56, 1 }
0x18d1   :  { %v1538_v4 = vpop.f32.mrb[30].mxu1 }
0x18d2   :  { %v1935_v44 = vpop.f32.mrb[31].mxu1  ;;  %v1553_v19 = vrot.slane %v1551_v12, 1  ;;  %v1544_v22 = vadd.f32 %v1542_v50, %v2250_v21 }
0x18d4   :  { %v1828_v23 = vmul.f32 -1.442695, %v1544_v22 }
0x18d6   :  { %2054 = vpow2.f32 %v1828_v23 }
0x18e0   :  { %v2055_v10 = vpop.eup %2054 }
0x18e1   :  { %v1548_v24 = vadd.f32 1.0, %v2055_v10 }
0x18e3   :  { %2056 = vrcp.f32 %v1548_v24  ;;  %v1974_v24 = vld [vmem:[#allocation2 + $0x60] ss:$8 sps:$4 sm:$0xff]  }
0x18e4   :  { %1937 = vmatpush3.bf16.msra.mxu0 %v1974_v24 }
0x18e5   :  { %1938 = vmatprep.subr.bf16.mxu0 %v2158_v0 }
0x18e6   :  { %v1449_v13 = vpop.f32.mrb[28].mxu0 }
0x18e7   :  { %1459 = vrot.lane.b32.xlu0 %v1449_v13, %s2162_s14  ;;  %v1451_v14 = vpop.f32.mrb[29].mxu0  ;;  %v1456_v16 = vadd.f32 %v2619_v26, %v1449_v13 }
0x18e8   :  { %v1472_v15 = vadd.f32 %v1451_v14, %v2330_v3  ;;  %1461 = vrot.lane.b32.xlu1 %v1451_v14, %s2162_s14  ;;  %v1453_v8 = vpop.f32.mrb[30].mxu0 }
0x18e9   :  { %v1454_v17 = vpop.f32.mrb[31].mxu0 }
0x18eb   :  { %1474 = vrot.lane.b32.xlu0 %v1472_v15, %s2164_s18 }
0x18ec   :  { %1554 = vrot.lane.b32.xlu1 %v1553_v19, %s2160_s12 }
0x18ed   :  { %v2057_v30 = vpop.eup %2056 }
0x1959   :  { %v1460_v25 = vpop.permute.xlu0 %1459 }
0x195a   :  { %v1462_v28 = vpop.permute.xlu1 %1461 }
0x195b   :  { %v1463_v29 = vsel %vm79_vm1, %v1460_v25, %v1462_v28 }
0x195c   :  { %v1465_v20 = vadd.f32 %v1463_v29, %v1456_v16 }
0x195d   :  { %v1475_v39 = vpop.permute.xlu0 %1474 }
0x195e   :  { %v1826_v32 = vmul.f32 -1.442695, %v1465_v20  ;;  %v1555_v33 = vpop.permute.xlu1 %1554 }
0x195f   :  { %v1557_v34 = vmul.f32 %v2057_v30, %v1555_v33 }
0x1960   :  { %2058 = vpow2.f32 %v1826_v32 }
0x1961   :  { %1559 = vrot.lane.b32.xlu1 %v1557_v34, %s2160_s12 }
0x196a   :  { %v2059_v37 = vpop.eup %2058 }
0x196b   :  { %v1469_v18 = vadd.f32 1.0, %v2059_v37 }
0x196d   :  { %2060 = vrcp.f32 %v1469_v18 }
0x1977   :  { %v2061_v38 = vpop.eup %2060 }
0x1978   :  { %v1477_v41 = vmul.f32 %v2061_v38, %v1475_v39 }
0x197a   :  { %1479 = vrot.lane.b32.xlu0 %v1477_v41, %s2160_s12 }
0x19d3   :  { %v1560_v27 = vpop.permute.xlu1 %1559 }
0x19d4   :  { %v1562_v43 = vadd.f32 %v1560_v27, %v2250_v21 }
0x19d6   :  { %2062 = vtanh.f32 %v1562_v43 }
0x19e0   :  { %v2063_v49 = vpop.eup %2062 }
0x19e1   :  { %v1565_v31 = vrot.slane %v2063_v49, 1 }
0x19e3   :  { %v1567_v54 = vsub.f32 %v2592_v62, %v1565_v31 }
0x19e5   :  { %v1569_v57 = vrot.slane %v1567_v54, 7 }
0x19e7   :  { %1570 = vrot.lane.b32.xlu1 %v1569_v57, %s2164_s18 }
0x19ec   :  { %v1480_v42 = vpop.permute.xlu0 %1479 }
0x19ed   :  { %v1482_v60 = vadd.f32 %v1480_v42, %v1456_v16 }
0x19ef   :  { %2064 = vtanh.f32 %v1482_v60 }
0x19f9   :  { %v2065_v61 = vpop.eup %2064 }
0x19fa   :  { %v1484_v51 = vsub.f32 %v2598_v6, %v2065_v61 }
0x19fc   :  { %1486 = vrot.lane.b32.xlu0 %v1484_v51, %s2164_s18 }
0x1a59   :  { %v1571_v59 = vpop.permute.xlu1 %1570 }
0x1a5a   :  { %v1573_v1 = vmul.f32 %v2057_v30, %v1571_v59 }
0x1a5c   :  { %1575 = vrot.lane.b32.xlu1 %v1573_v1, %s2162_s14 }
0x1a6e   :  { %v1487_v21 = vpop.permute.xlu0 %1486 }
0x1a6f   :  { %v1489_v5 = vmul.f32 %v2061_v38, %v1487_v21 }
0x1a71   :  { %1491 = vrot.lane.b32.xlu0 %v1489_v5, %s2162_s14 }
0x1ace   :  { %v1576_v62 = vpop.permute.xlu1 %1575 }
0x1acf   :  { %v1578_v63 = vadd.f32 %v2063_v49, %v1576_v62 }
0x1ad1   :  { %v1579_v36 = vpack.c.bf16 %v1578_v63, %v1578_v63 }
0x1ad3   :  { %1582 = vrot.lane.b32.xlu0 %v1579_v36, %s2160_s12 }
0x1ae3   :  { %v1492_v7 = vpop.permute.xlu0 %1491 }
0x1ae4   :  { %v1494_v58 = vadd.f32 %v2065_v61, %v1492_v7 }
0x1ae6   :  { %v1580_v9 = vpack.c.bf16 %v1494_v58, %v1494_v58 }
0x1ae8   :  { %v1585_v45 = vshll.u32 %v1580_v9, 16 }
0x1aea   :  { %v1587_v6 = vrot.slane %v1585_v45, 5 }
0x1aec   :  { %1588 = vrot.lane.b32.xlu1 %v1587_v6, %s2164_s18 }
0x1b45   :  { %v1583_v2 = vpop.permute.xlu0 %1582 }
0x1b5e   :  { %v1589_v46 = vpop.permute.xlu1 %1588 }
0x1b5f   :  { %v1592_v47 = vsel %vm79_vm1, %v1583_v2, %v1589_v46 }
0x1b60   :  { %v1593_v48 = vshrl.u32 %v1592_v47, 16 }
0x1b62   :  { %v1595_v52 = vrot.slane %v1593_v48, 3 }
0x1b64   :  { %1829 = vmatmul.mubr.msk.bf16.vlgmr.msra.gmra.mrb[32].mxu1 %vm289_vm2, %v1595_v52 }
0x1c37   :  { %v1633_v53 = vpop.f32.mrb[32].mxu1 }
0x1c38   :  { %1643 = vrot.lane.b32.xlu0 %v1633_v53, %s2162_s14  ;;  %v1635_v55 = vpop.f32.mrb[33].mxu1  ;;  %v1640_v4 = vadd.f32 %v2619_v26, %v1633_v53  ;;  %v1975_v26 = vld [vmem:[#allocation2 + $0x70] ss:$8 sps:$4 sm:$0xff]  }
0x1c39   :  { %v1656_v35 = vadd.f32 %v1635_v55, %v2330_v3  ;;  %1645 = vrot.lane.b32.xlu1 %v1635_v55, %s2162_s14  ;;  %v1637_v40 = vpop.f32.mrb[34].mxu1  ;;  %1939 = vmatpush3.bf16.msra.mxu0 %v1975_v26 }
0x1c3a   :  { %v1638_v56 = vpop.f32.mrb[35].mxu1 }
0x1c3c   :  { %1658 = vrot.lane.b32.xlu0 %v1656_v35, %s2164_s18 }
0x1caa   :  { %v1644_v11 = vpop.permute.xlu0 %1643 }
0x1cab   :  { %v1646_v44 = vpop.permute.xlu1 %1645 }
0x1cac   :  { %v1647_v12 = vsel %vm79_vm1, %v1644_v11, %v1646_v44 }
0x1cad   :  { %v1649_v13 = vadd.f32 %v1647_v12, %v1640_v4 }
0x1cae   :  { %v1659_v3 = vpop.permute.xlu0 %1658 }
0x1caf   :  { %v1830_v14 = vmul.f32 -1.442695, %v1649_v13 }
0x1cb1   :  { %2066 = vpow2.f32 %v1830_v14 }
0x1cbb   :  { %v2067_v15 = vpop.eup %2066 }
0x1cbc   :  { %v1653_v8 = vadd.f32 1.0, %v2067_v15 }
0x1cbe   :  { %2068 = vrcp.f32 %v1653_v8 }
0x1cc8   :  { %v2069_v17 = vpop.eup %2068 }
0x1cc9   :  { %v1661_v19 = vmul.f32 %v2069_v17, %v1659_v3 }
0x1ccb   :  { %1663 = vrot.lane.b32.xlu1 %v1661_v19, %s2160_s12 }
0x1d3d   :  { %v1664_v50 = vpop.permute.xlu1 %1663 }
0x1d3e   :  { %v1666_v22 = vadd.f32 %v1664_v50, %v1640_v4 }
0x1d40   :  { %2070 = vtanh.f32 %v1666_v22 }
0x1d4a   :  { %v2071_v23 = vpop.eup %2070 }
0x1d4b   :  { %v1668_v10 = vsub.f32 %v1494_v58, %v2071_v23 }
0x1d4d   :  { %1670 = vrot.lane.b32.xlu0 %v1668_v10, %s2164_s18 }
0x1dbf   :  { %v1671_v25 = vpop.permute.xlu0 %1670 }
0x1dc0   :  { %v1673_v16 = vmul.f32 %v2069_v17, %v1671_v25 }
0x1dc2   :  { %1675 = vrot.lane.b32.xlu1 %v1673_v16, %s2162_s14 }
0x1dc6   :  { %1680 = vrot.lane.b32.xlu1 %v1578_v63, %s2160_s12 }
0x1e34   :  { %v1676_v28 = vpop.permute.xlu1 %1675 }
0x1e35   :  { %v1678_v29 = vadd.f32 %v2071_v23, %v1676_v28 }
0x1e37   :  { %v1692_v20 = vpack.c.bf16 %v1678_v29, %v1678_v29 }
0x1e38   :  { %v1681_v30 = vpop.permute.xlu1 %1680 }
0x1e39   :  { %1684 = vst.msk [vmem:[#allocation6 - $0x7] sm:$0x80] %vm1683_vm3, %v1681_v30  ;;  %1694 = vrot.lane.b32.xlu0 %v1692_v20, %s2160_s12 }
0x1e3d   :  { %1686 = vrot.lane.b32.xlu0 %v1678_v29, %s2160_s12 }
0x1eab   :  { %v1695_v32 = vpop.permute.xlu0 %1694 }
0x1eac   :  { %1941 = vmatmul.mubr.msk.bf16.vlgmr.msra.gmra.mrb[32].mxu0 %vm79_vm1, %v1695_v32 }
0x1eaf   :  { %v1687_v0 = vpop.permute.xlu0 %1686 }
0x1eb0   :  { %1691 = vst.msk [vmem:[#allocation6 + $0x1] sm:$0x1] %vm1690_vm4, %v1687_v0 }
0x1eb1   :  { %2116 = shalt.err (!%p2113_p12)
}
0x1eb2   :  { %s2117_s28 = scalar_lea.hbm %s2682_s5, 32 }
0x1eb3   :  { %p2118_p13 = scmp.ne.s32.totalorder %s2682_s5, %s2117_s28  ;;  %p2121_p0 = scmp.lt.u32.totalorder %s2117_s28, %s2682_s5 }
0x1eb5   :  { %p2123_p1 = pnand %p2121_p0, %p2118_p13 }
0x1eb7   :  { %2126 = shalt.err (!%p2123_p1)
}
0x1eb8   :  { %s2166_s7 = smov 16   ;;  %s2167_s8 = smov 1   ;;  %v60_v33 = vld [vmem:[%s2680_s3 + $0x4] sm:$0x1]  ;;  %vm1751_vm5 = vcmask 122880  }
0x1eb9   :  { %1774 = dma.vmem_to_hbm [thread:$0]  %s1769_s24, 32, %s2682_s5, [#allocation7], %s2166_s7, %s2166_s7, %s2167_s8  }
0x1eba   :  { %s2168_s0 = smov [#allocation5]  }
0x1ebb   :  { %s1759_s13 = sshll.u32 %s2168_s0, 4  ;;  %s1760_s13 = int_to_ptr.vmem [resolvable:$true] %s1759_s13 }
0x1ebc   :  { %s2127_s14 = scalar_lea.vmem %s1760_s13, 16  ;;  %s2131_s15 = scalar_lea.vmem %s1760_s13, 32 }
0x1ebd   :  { %p2128_p2 = scmp.ne.s32.totalorder %s1760_s13, %s2127_s14  ;;  %p2132_p3 = scmp.lt.s32.totalorder %s1760_s13, %s1760_s13 }
0x1ebe   :  { %p2133_p4 = scmp.lt.s32.totalorder %s2131_s15, %s2127_s14 }
0x1ec0   :  { %p2134_p5 = por %p2133_p4, %p2132_p3 }
0x1ec2   :  { %p2135_p6 = pnand %p2134_p5, %p2128_p2 }
0x1f7f   :  { %v1745_v34 = vpop.f32.mrb[32].mxu0 }
0x1f80   :  { %v1746_v37 = vadd.f32 %v1745_v34, %v60_v33  ;;  %v1942_v18 = vpop.f32.mrb[33].mxu0 }
0x1f81   :  { %v1748_v38 = vpop.f32.mrb[34].mxu0 }
0x1f82   :  { %v1943_v39 = vpop.f32.mrb[35].mxu0  ;;  %1752 = vst.msk [vmem:[#allocation5] sm:$0x1] %vm1751_vm5, %v1746_v37 }
0x1f83   :  { %2138 = shalt.err (!%p2135_p6)
}
0x1f84   :  { %s2139_s16 = scalar_lea.hbm %s2681_s4, 16 }
0x1f85   :  { %p2140_p7 = scmp.ne.s32.totalorder %s2681_s4, %s2139_s16  ;;  %p2143_p8 = scmp.lt.u32.totalorder %s2139_s16, %s2681_s4 }
0x1f87   :  { %p2145_p9 = pnand %p2143_p8, %p2140_p7 }
0x1f89   :  { %2148 = shalt.err (!%p2145_p9)
}
0x1f8a   :  { %1762 = dma.vmem_to_hbm [thread:$0]  %s1760_s13, 16, %s2681_s4, [#allocation4]  }
0x1f8b   :  { %2151 = dma.done.wait [#allocation4], 16  }
0x1f8c   :  { %2152 = vsyncadd [#allocation4], 4294967280 }
0x1f8d   :  { %2153 = dma.done.wait [#allocation7], 32  }
0x1f8e   :  { %2154 = vsyncadd [#allocation7], 4294967264 }
0x1f8f   :  { %1781 = vsyncpa [#allocation3], 1 }
0x1f90   :  { %1782 = vsyncpa [#allocation4], 1 }
0x1f91   :  { %1783 = vsyncpa [#allocation7], 1 }

</bundles_post_ra>
